<compile_context>
chip_gen: v5e
topology: v5e:2x2
jax: 0.10.0
libtpu: 0.0.40
codegen_flags: <defaults>
</compile_context>

<pallas_src>
import jax
import jax.numpy as jnp
from jax import lax
from jax.experimental import pallas as pl
from jax.experimental.pallas import tpu as pltpu

_MIB = 1024 * 1024


def _round_up(x, m):
    return ((x + m - 1) // m) * m


def _pad2(a, rows, cols, dtype=None):
    dtype = a.dtype if dtype is None else dtype
    out = jnp.zeros((rows, cols), dtype)
    return out.at[: a.shape[0], : a.shape[1]].set(a.astype(dtype))


# --------------------------------------------------------------------------- #
# Kernels
# --------------------------------------------------------------------------- #
def _gru_evolve_kernel(xt_ref, w0_ref, wi_ref, wh_ref, bi_ref, bh_ref, c_ref,
                       weff_ref):
    """One GRU step (input = X_tilde rows, hidden = W rows), gate order (r,z,n).
    Gate weights arrive pre-transposed/packed as (Fp, 3Fp) so both gate matmuls
    are plain MXU dots; the gcn_norm scalar c is folded here (O(F^2))."""
    Fp = w0_ref.shape[1]
    gi = jnp.dot(xt_ref[...], wi_ref[...],
                 preferred_element_type=jnp.float32) + bi_ref[...]
    gh = jnp.dot(w0_ref[...], wh_ref[...],
                 preferred_element_type=jnp.float32) + bh_ref[...]
    r = jax.nn.sigmoid(gi[:, 0:Fp] + gh[:, 0:Fp])
    z = jax.nn.sigmoid(gi[:, Fp:2 * Fp] + gh[:, Fp:2 * Fp])
    n = jnp.tanh(gi[:, 2 * Fp:3 * Fp] + r * gh[:, 2 * Fp:3 * Fp])
    w_new = (1.0 - z) * n + z * w0_ref[...]
    weff_ref[...] = c_ref[0, 0] * w_new


def _xw_kernel(x_ref, w_ref, o_ref):
    """Row-tiled  XW = X @ W_eff, emitted as bf16 (halves kernel-3 input bytes)."""
    o_ref[...] = jnp.dot(x_ref[...], w_ref[...],
                         preferred_element_type=jnp.float32).astype(o_ref.dtype)


def _agg_kernel_resident(a_ref, xw_ref, o_ref, acc_ref):
    """out = Ahat @ XW with XW fully resident in VMEM (read from HBM once).
    Native bf16 x bf16 MXU dot, f32 accumulation, reduction axis last."""
    k = pl.program_id(1)
    tk = a_ref.shape[1]

    @pl.when(k == 0)
    def _():
        acc_ref[...] = jnp.zeros_like(acc_ref)

    off = pl.multiple_of(k * tk, tk)
    acc_ref[...] += jnp.dot(a_ref[...], xw_ref[pl.ds(off, tk), :],
                            preferred_element_type=jnp.float32)

    @pl.when(k == pl.num_programs(1) - 1)
    def _():
        o_ref[...] = acc_ref[...]


def _agg_kernel_stream(a_ref, xw_ref, o_ref, acc_ref):
    """Fallback for very large graphs where XW does not fit resident in VMEM:
    XW streamed per (k) block; still bf16 x bf16 with f32 accumulation."""
    @pl.when(pl.program_id(1) == 0)
    def _():
        acc_ref[...] = jnp.zeros_like(acc_ref)

    acc_ref[...] += jnp.dot(a_ref[...], xw_ref[...],
                            preferred_element_type=jnp.float32)

    @pl.when(pl.program_id(1) == pl.num_programs(1) - 1)
    def _():
        o_ref[...] = acc_ref[...]


# --------------------------------------------------------------------------- #
# Graph / parameter preparation (plain JAX glue)
# --------------------------------------------------------------------------- #
def _graph_structure(edge_index, num_nodes, n_pad):
    """Padded dense Ahat built directly in bf16 (integer edge counts + self-loop
    are exact in bf16 while per-pair multiplicity + 1 <= 256), plus the scalar
    c = mean(gcn_norm edge weights) produced by message()'s .mean(dim=-1)."""
    src, dst = edge_index[0], edge_index[1]
    e = src.shape[0]
    Ahat = jnp.zeros((n_pad, n_pad), jnp.bfloat16)
    Ahat = Ahat.at[dst, src].add(jnp.ones((e,), jnp.bfloat16))
    loop = jnp.arange(num_nodes)
    Ahat = Ahat.at[loop, loop].add(jnp.ones((num_nodes,), jnp.bfloat16))
    # degrees in f32 straight from the edge list: d_i = 1 + (#edges into i)
    deg = jnp.ones((num_nodes,), jnp.float32).at[dst].add(1.0)
    dinv = lax.rsqrt(deg)
    src_all = jnp.concatenate([src, loop])
    dst_all = jnp.concatenate([dst, loop])
    c = jnp.mean(dinv[src_all] * dinv[dst_all]).reshape(1, 1).astype(jnp.float32)
    return Ahat, c


def _pack_gru_gates(w, b, F, Fp):
    """(3F, F) gate-stacked GRU weight -> pre-transposed (Fp, 3Fp) column blocks
    (r|z|n); bias -> (1, 3Fp).  One-time host-side packing; the kernel then uses
    plain jnp.dot (no in-kernel transpose)."""
    wp = jnp.zeros((Fp, 3 * Fp), jnp.float32)
    bp = jnp.zeros((1, 3 * Fp), jnp.float32)
    for g in range(3):
        wp = wp.at[:F, g * Fp:g * Fp + F].set(w[g * F:(g + 1) * F].T)
        bp = bp.at[0, g * Fp:g * Fp + F].set(b[g * F:(g + 1) * F])
    return wp, bp


# --------------------------------------------------------------------------- #
# Forward
# --------------------------------------------------------------------------- #
def evolvegcnh_forward(X, edge_index, params):
    N, F = X.shape
    Fp = _round_up(max(F, 128), 128)        # lane-dense feature axis
    if N >= 2048:
        TM = TK = 512                       # ~85% of HBM roofline for mem-bound tiles
    elif N >= 512:
        TM = TK = 256
    else:
        TM = TK = 128
    Np = _round_up(N, TM)                   # zero-pad so every block is full

    # kernel-2 row block decoupled from TM (small mem-bound pass; bigger is better)
    TM2 = TM
    for cand in (2048, 1024, 512, 256, 128):
        if Np % cand == 0:
            TM2 = max(cand, TM) if Np % max(cand, TM) == 0 else cand
            TM2 = cand
            break

    # ---- TopKPooling (ratio = F/N -> k = F rows) --------------------------- #
    # TODO(synk): the data-dependent top-k sort/gather has no clean Pallas
    # equivalent; it stays in plain JAX (tiny O(N log N) work).
    p = params["pool_weight"]
    score = jnp.tanh((X @ p) / jnp.sqrt(jnp.sum(p * p)))
    top_vals, top_idx = jax.lax.top_k(score, F)
    X_tilde = X[top_idx] * top_vals[:, None]                      # (F, F)

    # ---- dense normalized structure + collapsed scalar edge weight --------- #
    # TODO(synk): for truly sparse graphs, replace the dense Ahat with a
    # block-sparse tile list via PrefetchScalarGridSpec (skip zero tiles).
    Ahat_pad, c = _graph_structure(edge_index, N, Np)             # bf16, exact counts
    X_pad = _pad2(X.astype(jnp.float32), Np, Fp)

    # ---- GRU parameter packing (pre-transposed fused gate blocks) ---------- #
    Wi_pack, bi_pack = _pack_gru_gates(params["weight_ih"], params["bias_ih"], F, Fp)
    Wh_pack, bh_pack = _pack_gru_gates(params["weight_hh"], params["bias_hh"], F, Fp)
    Xt_pad = _pad2(X_tilde.astype(jnp.float32), Fp, Fp)
    W0_pad = _pad2(params["initial_weight"].astype(jnp.float32), Fp, Fp)

    vmem = pl.BlockSpec(memory_space=pltpu.MemorySpace.VMEM)
    smem = pl.BlockSpec(memory_space=pltpu.MemorySpace.SMEM)

    # ---- kernel 1: evolve the weight with one GRU step (tiny, gridless) ---- #
    W_eff = pl.pallas_call(
        _gru_evolve_kernel,
        out_shape=jax.ShapeDtypeStruct((Fp, Fp), jnp.float32),
        in_specs=[vmem] * 6 + [smem],
        out_specs=vmem,
    )(Xt_pad, W0_pad, Wi_pack, Wh_pack, bi_pack, bh_pack, c)

    # ---- kernel 2: XW = X @ W_eff, row-tiled, bf16 output ------------------ #
    XW = pl.pallas_call(
        _xw_kernel,
        out_shape=jax.ShapeDtypeStruct((Np, Fp), jnp.bfloat16),
        grid_spec=pltpu.PrefetchScalarGridSpec(
            num_scalar_prefetch=0,
            grid=(Np // TM2,),
            in_specs=[pl.BlockSpec((TM2, Fp), lambda i: (i, 0)),
                      pl.BlockSpec((Fp, Fp), lambda i: (0, 0))],
            out_specs=pl.BlockSpec((TM2, Fp), lambda i: (i, 0))),
        compiler_params=pltpu.CompilerParams(
            dimension_semantics=("parallel",),
            vmem_limit_bytes=32 * _MIB),
    )(X_pad, W_eff)

    # ---- kernel 3: out = Ahat @ XW, tiled + pipelined, f32 accumulator ----- #
    xw_bytes = Np * Fp * 2                          # bf16 XW footprint
    resident = xw_bytes <= 12 * _MIB                # keep 2x-buffered copy < 24 MiB (v7x-safe)
    if resident:
        xw_spec = pl.BlockSpec((Np, Fp), lambda i, k: (0, 0))   # DMA'd once, stays resident
        agg_kernel = _agg_kernel_resident
        xw_hbm_bytes = 2 * Np * Fp
        vmem_need = (2 * xw_bytes + 4 * TM * TK * 2
                     + 2 * TM * Fp * 4 + TM * Fp * 4 + 8 * _MIB)
    else:
        xw_spec = pl.BlockSpec((TK, Fp), lambda i, k: (k, 0))
        agg_kernel = _agg_kernel_stream
        xw_hbm_bytes = 2 * Np * Fp * (Np // TM)
        vmem_need = (4 * TK * Fp * 2 + 4 * TM * TK * 2
                     + 2 * TM * Fp * 4 + TM * Fp * 4 + 8 * _MIB)
    vmem_limit = int(min(64 * _MIB, max(32 * _MIB, vmem_need)))   # 64 MiB cap: v7x-safe

    out_pad = pl.pallas_call(
        agg_kernel,
        out_shape=jax.ShapeDtypeStruct((Np, Fp), jnp.float32),
        grid_spec=pltpu.PrefetchScalarGridSpec(
            num_scalar_prefetch=0,
            grid=(Np // TM, Np // TK),                     # reduction axis last
            in_specs=[pl.BlockSpec((TM, TK), lambda i, k: (i, k)),
                      xw_spec],
            out_specs=pl.BlockSpec((TM, Fp), lambda i, k: (i, 0)),
            scratch_shapes=[pltpu.VMEM((TM, Fp), jnp.float32)]),
        compiler_params=pltpu.CompilerParams(
            dimension_semantics=("parallel", "arbitrary"),
            vmem_limit_bytes=vmem_limit),
        cost_estimate=pl.CostEstimate(
            flops=2 * Np * Np * Fp,
            transcendentals=0,
            bytes_accessed=2 * Np * Np + xw_hbm_bytes + 4 * Np * Fp),
    )(Ahat_pad, XW)

    return out_pad[:N, :F]


# --------------------------------------------------------------------------- #
# Pure-JAX reference + self-test
# --------------------------------------------------------------------------- #
def _reference(X, edge_index, params):
    """Pure-JAX f32 reference mirroring the PyTorch EvolveGCNH forward."""
    N, F = X.shape
    p = params["pool_weight"]
    score = jnp.tanh((X @ p) / jnp.sqrt(jnp.sum(p * p)))
    vals, idx = jax.lax.top_k(score, F)
    X_tilde = X[idx] * vals[:, None]
    W = params["initial_weight"]
    gi = X_tilde @ params["weight_ih"].T + params["bias_ih"]
    gh = W @ params["weight_hh"].T + params["bias_hh"]
    r = jax.nn.sigmoid(gi[:, :F] + gh[:, :F])
    z = jax.nn.sigmoid(gi[:, F:2 * F] + gh[:, F:2 * F])
    n = jnp.tanh(gi[:, 2 * F:] + r * gh[:, 2 * F:])
    Wn = (1.0 - z) * n + z * W
    src, dst = edge_index[0], edge_index[1]
    A = jnp.zeros((N, N), jnp.float32).at[dst, src].add(1.0)
    Ahat = A + jnp.eye(N, dtype=jnp.float32)
    deg = jnp.sum(Ahat, axis=1)
    dinv = 1.0 / jnp.sqrt(deg)
    loop = jnp.arange(N)
    norm = jnp.concatenate([dinv[src] * dinv[dst], dinv[loop] * dinv[loop]])
    c = jnp.mean(norm)
    return c * (Ahat @ (X @ Wn))


def _init_params(key, F):
    k0, k1, k2, k3, k4, k5 = jax.random.split(key, 6)
    glorot = (6.0 / (F + F)) ** 0.5
    u = 1.0 / (F ** 0.5)
    return {
        "initial_weight": jax.random.uniform(k0, (F, F), jnp.float32, -glorot, glorot),
        "pool_weight": jax.random.uniform(k5, (F,), jnp.float32, -u, u),
        "weight_ih": jax.random.uniform(k1, (3 * F, F), jnp.float32, -u, u),
        "weight_hh": jax.random.uniform(k2, (3 * F, F), jnp.float32, -u, u),
        "bias_ih": jax.random.uniform(k3, (3 * F,), jnp.float32, -u, u),
        "bias_hh": jax.random.uniform(k4, (3 * F,), jnp.float32, -u, u),
    }


if __name__ == "__main__":
    N, F, E = 256, 32, 512          # nodes, in_channels, edges  (F <= N required)
    key = jax.random.PRNGKey(0)
    kx, ke1, ke2, kp = jax.random.split(key, 4)

    X = jax.random.normal(kx, (N, F), jnp.float32)
    src = jax.random.randint(ke1, (E,), 0, N)
    off = jax.random.randint(ke2, (E,), 1, N)
    dst = (src + off) % N                            # no self-loops in the input
    edge_index = jnp.stack([src, dst]).astype(jnp.int32)

    params = _init_params(kp, F)

    out = jax.block_until_ready(evolvegcnh_forward(X, edge_index, params))
    ref = _reference(X, edge_index, params)

    assert out.shape == (N, F)
    # bf16 XW in the dominant product injects ~2^-9 relative rounding; compare
    # against the pure-f32 reference with a correspondingly relaxed tolerance.
    max_err = float(jnp.max(jnp.abs(out - ref)))
    assert jnp.allclose(out, ref, atol=1e-2, rtol=1e-2), f"mismatch vs reference (max abs err {max_err})"
    print("KERNEL_OK")
</pallas_src>

<mosaic_0001>
module attributes {stable_mosaic.version = 11 : i64} {
  func.func @_gru_evolve_kernel(%arg0: memref<128x128xf32, #tpu.memory_space<vmem>>, %arg1: memref<128x128xf32, #tpu.memory_space<vmem>>, %arg2: memref<128x384xf32, #tpu.memory_space<vmem>>, %arg3: memref<128x384xf32, #tpu.memory_space<vmem>>, %arg4: memref<1x384xf32, #tpu.memory_space<vmem>>, %arg5: memref<1x384xf32, #tpu.memory_space<vmem>>, %arg6: memref<1x1xf32, #tpu.memory_space<smem>>, %arg7: memref<128x128xf32, #tpu.memory_space<vmem>>) attributes {dimension_semantics = [], scalar_prefetch = 0 : i64, scratch_operands = 0 : i64, tpu.core_type = #tpu.core_type<tc>} {
    %c0 = arith.constant 0 : index
    %c0_0 = arith.constant 0 : index
    %0 = vector.load %arg0[%c0, %c0_0] : memref<128x128xf32, #tpu.memory_space<vmem>>, vector<128x128xf32>
    %c0_1 = arith.constant 0 : index
    %c0_2 = arith.constant 0 : index
    %1 = vector.load %arg2[%c0_1, %c0_2] : memref<128x384xf32, #tpu.memory_space<vmem>>, vector<128x384xf32>
    %cst = arith.constant dense<0.000000e+00> : vector<128x384xf32>
    %2 = tpu.matmul %0, %1, %cst {dimension_numbers = #tpu.dot_dimension_numbers<[1], [0], [0], [1], [0, 0, 1, 1], [], []>} : vector<128x128xf32>, vector<128x384xf32>, vector<128x384xf32> -> vector<128x384xf32>
    %c0_3 = arith.constant 0 : index
    %c0_4 = arith.constant 0 : index
    %3 = vector.load %arg4[%c0_3, %c0_4] : memref<1x384xf32, #tpu.memory_space<vmem>>, vector<1x384xf32>
    %4 = vector.broadcast %3 : vector<1x384xf32> to vector<128x384xf32>
    %5 = arith.addf %2, %4 : vector<128x384xf32>
    %c0_5 = arith.constant 0 : index
    %c0_6 = arith.constant 0 : index
    %6 = vector.load %arg1[%c0_5, %c0_6] : memref<128x128xf32, #tpu.memory_space<vmem>>, vector<128x128xf32>
    %c0_7 = arith.constant 0 : index
    %c0_8 = arith.constant 0 : index
    %7 = vector.load %arg3[%c0_7, %c0_8] : memref<128x384xf32, #tpu.memory_space<vmem>>, vector<128x384xf32>
    %cst_9 = arith.constant dense<0.000000e+00> : vector<128x384xf32>
    %8 = tpu.matmul %6, %7, %cst_9 {dimension_numbers = #tpu.dot_dimension_numbers<[1], [0], [0], [1], [0, 0, 1, 1], [], []>} : vector<128x128xf32>, vector<128x384xf32>, vector<128x384xf32> -> vector<128x384xf32>
    %c0_10 = arith.constant 0 : index
    %c0_11 = arith.constant 0 : index
    %9 = vector.load %arg5[%c0_10, %c0_11] : memref<1x384xf32, #tpu.memory_space<vmem>>, vector<1x384xf32>
    %10 = vector.broadcast %9 : vector<1x384xf32> to vector<128x384xf32>
    %11 = arith.addf %8, %10 : vector<128x384xf32>
    %12 = vector.extract_strided_slice %5 {offsets = [0, 0], sizes = [128, 128], strides = [1, 1]} : vector<128x384xf32> to vector<128x128xf32>
    %13 = vector.extract_strided_slice %11 {offsets = [0, 0], sizes = [128, 128], strides = [1, 1]} : vector<128x384xf32> to vector<128x128xf32>
    %14 = arith.addf %12, %13 : vector<128x128xf32>
    %15 = arith.negf %14 : vector<128x128xf32>
    %16 = math.exp %15 : vector<128x128xf32>
    %cst_12 = arith.constant 1.000000e+00 : f32
    %17 = vector.broadcast %cst_12 : f32 to vector<128x128xf32>
    %18 = arith.addf %17, %16 : vector<128x128xf32>
    %19 = arith.divf %17, %18 : vector<128x128xf32>
    %20 = vector.extract_strided_slice %5 {offsets = [0, 128], sizes = [128, 128], strides = [1, 1]} : vector<128x384xf32> to vector<128x128xf32>
    %21 = vector.extract_strided_slice %11 {offsets = [0, 128], sizes = [128, 128], strides = [1, 1]} : vector<128x384xf32> to vector<128x128xf32>
    %22 = arith.addf %20, %21 : vector<128x128xf32>
    %23 = arith.negf %22 : vector<128x128xf32>
    %24 = math.exp %23 : vector<128x128xf32>
    %cst_13 = arith.constant 1.000000e+00 : f32
    %25 = vector.broadcast %cst_13 : f32 to vector<128x128xf32>
    %26 = arith.addf %25, %24 : vector<128x128xf32>
    %27 = arith.divf %25, %26 : vector<128x128xf32>
    %28 = vector.extract_strided_slice %5 {offsets = [0, 256], sizes = [128, 128], strides = [1, 1]} : vector<128x384xf32> to vector<128x128xf32>
    %29 = vector.extract_strided_slice %11 {offsets = [0, 256], sizes = [128, 128], strides = [1, 1]} : vector<128x384xf32> to vector<128x128xf32>
    %30 = arith.mulf %19, %29 : vector<128x128xf32>
    %31 = arith.addf %28, %30 : vector<128x128xf32>
    %32 = math.tanh %31 : vector<128x128xf32>
    %cst_14 = arith.constant 1.000000e+00 : f32
    %33 = vector.broadcast %cst_14 : f32 to vector<128x128xf32>
    %34 = arith.subf %33, %27 : vector<128x128xf32>
    %35 = arith.mulf %34, %32 : vector<128x128xf32>
    %c0_15 = arith.constant 0 : index
    %c0_16 = arith.constant 0 : index
    %36 = vector.load %arg1[%c0_15, %c0_16] : memref<128x128xf32, #tpu.memory_space<vmem>>, vector<128x128xf32>
    %37 = arith.mulf %27, %36 : vector<128x128xf32>
    %38 = arith.addf %35, %37 : vector<128x128xf32>
    %c0_17 = arith.constant 0 : index
    %c0_18 = arith.constant 0 : index
    %39 = memref.load %arg6[%c0_17, %c0_18] : memref<1x1xf32, #tpu.memory_space<smem>>
    %40 = vector.broadcast %39 : f32 to vector<128x128xf32>
    %41 = arith.mulf %40, %38 : vector<128x128xf32>
    %c0_19 = arith.constant 0 : index
    %c0_20 = arith.constant 0 : index
    %42 = vector.load %arg7[%c0_19, %c0_20] : memref<128x128xf32, #tpu.memory_space<vmem>>, vector<128x128xf32>
    tpu.vector_store %arg7[%c0_19, %c0_20], %41 {strides = array<i32>} : memref<128x128xf32, #tpu.memory_space<vmem>>, vector<128x128xf32>,
    return
  }
}

</mosaic_0001>

<bundles_post_ra>
// kernel: tpu_custom_call.1
= control target key start
LH: loop header
LB: loop body
LE: loop exit
PB: predicated region body
PF: predicated region fallthrough
CT: control target
= control target key end

     0   :  { %13 = vsyncpa [#allocation4], 0  ;;  %s2921_s0 = inlined_call_operand.hbm [shape: f32[128,128], index: 0, kind: input, shape index: {}]   ;;  %s2922_s1 = inlined_call_operand.hbm [shape: f32[128,128], index: 1, kind: input, shape index: {}]   ;;  %s2923_s2 = inlined_call_operand.hbm [shape: f32[128,384], index: 2, kind: input, shape index: {}]   ;;  %s2924_s3 = inlined_call_operand.hbm [shape: f32[128,384], index: 3, kind: input, shape index: {}]   ;;  %s2925_s4 = inlined_call_operand.vmem [shape: f32[1,384], index: 4, kind: input, shape index: {}]   ;;  %s2926_s5 = inlined_call_operand.vmem [shape: f32[1,384], index: 5, kind: input, shape index: {}]   ;;  %s2927_s6 = inlined_call_operand.<no memory space> [shape: f32[1,1], index: 6, kind: input, shape index: {}]   ;;  %s2928_s7 = inlined_call_operand.hbm [shape: f32[128,128], index: 7, kind: output, shape index: {}]  }
   0x1   :  { %14 = vsyncpa [#allocation7], 0 }
   0x2   :  { %15 = vsyncpa [#allocation10], 0 }
   0x3   :  { %16 = vsyncpa [#allocation5], 0  ;;  %s34_s26 = sshll.u32 %s2922_s1, 4  ;;  %s1805_s27 = smov [#allocation6]   ;;  %s35_s26 = int_to_ptr.hbm [resolvable:$true] %s34_s26 }
   0x4   :  { %s36_s28 = sshll.u32 %s1805_s27, 4  ;;  %s21_s8 = sshll.u32 %s2921_s0, 4  ;;  %s37_s28 = int_to_ptr.vmem [resolvable:$true] %s36_s28  ;;  %s22_s8 = int_to_ptr.hbm [resolvable:$true] %s21_s8 }
   0x5   :  { %s1806_s9 = smov 128   ;;  %s1807_s10 = smov 8  }
   0x6   :  { %42 = dma.hbm_to_vmem [thread:$0]  %s35_s26, 2048, %s37_s28, [#allocation7], %s1806_s9, %s1806_s9, %s1807_s10  }
   0x7   :  { %s1808_s11 = smov [#allocation3]   ;;  %s47_s1 = sshll.u32 %s2923_s2, 4  ;;  %s48_s1 = int_to_ptr.hbm [resolvable:$true] %s47_s1 }
   0x8   :  { %s23_s12 = sshll.u32 %s1808_s11, 4  ;;  %s1809_s0 = smov [#allocation8]   ;;  %s24_s12 = int_to_ptr.vmem [resolvable:$true] %s23_s12 }
   0x9   :  { %29 = dma.hbm_to_vmem [thread:$0]  %s22_s8, 2048, %s24_s12, [#allocation4], %s1806_s9, %s1806_s9, %s1807_s10  }
   0xa   :  { %s49_s15 = sshll.u32 %s1809_s0, 4  ;;  %s60_s18 = sshll.u32 %s2924_s3, 4  ;;  %s50_s15 = int_to_ptr.vmem [resolvable:$true] %s49_s15  ;;  %s61_s18 = int_to_ptr.hbm [resolvable:$true] %s60_s18 }
   0xb   :  { %s1810_s19 = smov 384   ;;  %s1811_s20 = smov 24  }
   0xc   :  { %55 = dma.hbm_to_vmem [thread:$0]  %s48_s1, 6144, %s50_s15, [#allocation7], %s1810_s19, %s1810_s19, %s1811_s20  }
   0xd   :  { %s1812_s21 = smov [#allocation9]  }
   0xe   :  { %s62_s22 = sshll.u32 %s1812_s21, 4  ;;  %s63_s22 = int_to_ptr.vmem [resolvable:$true] %s62_s22 }
   0xf   :  { %68 = dma.hbm_to_vmem [thread:$0]  %s61_s18, 6144, %s63_s22, [#allocation10], %s1810_s19, %s1810_s19, %s1811_s20  }
  0x10   :  { %1797 = dma.done.wait [#allocation4], 2048  }
  0x11   :  { %1798 = vsyncadd [#allocation4], 4294965248 }
  0x12   :  { %1799 = dma.done.wait [#allocation7], 8192  }
  0x13   :  { %1800 = vsyncadd [#allocation7], 4294959104 }
  0x14   :  { %1801 = dma.done.wait [#allocation10], 6144  }
  0x15   :  { %1802 = vsyncadd [#allocation10], 4294961152  ;;  %v152_v0 = vld [vmem:[#allocation8 + $0x168] sm:$0xff]  ;;  %v153_v1 = vld [vmem:[#allocation8 + $0x170] sm:$0xff]  ;;  %s1417_s28 = sshll.u32 %s2928_s7, 4  ;;  %s1418_s28 = int_to_ptr.hbm [resolvable:$true] %s1417_s28 }
  0x16   :  { %v149_v2 = vld [vmem:[#allocation8 + $0x150] sm:$0xff]  ;;  %163 = vmatpush.msra.mxu0 %v152_v0  ;;  %1480 = vmatpush.msra.mxu3 %v153_v1  ;;  %v150_v3 = vld [vmem:[#allocation8 + $0x158] sm:$0xff]  ;;  %v147_v5 = vld [vmem:[#allocation8 + $0x140] sm:$0xff] }
  0x17   :  { %v146_v4 = vld [vmem:[#allocation8 + $0x138] sm:$0xff]  ;;  %1464 = vmatpush.msra.mxu2 %v152_v0  ;;  %228 = vmatpush.msra.mxu1 %v153_v1  ;;  %v143_v6 = vld [vmem:[#allocation8 + $0x120] sm:$0xff]  ;;  %v144_v7 = vld [vmem:[#allocation8 + $0x128] sm:$0xff] }
  0x18   :  { %164 = vmatpush.msra.mxu0 %v149_v2  ;;  %1481 = vmatpush.msra.mxu3 %v150_v3  ;;  %v140_v8 = vld [vmem:[#allocation8 + $0x108] sm:$0xff]  ;;  %v141_v9 = vld [vmem:[#allocation8 + $0x110] sm:$0xff]  ;;  %v138_v11 = vld [vmem:[#allocation8 + $0xf8] sm:$0xff] }
  0x19   :  { %1465 = vmatpush.msra.mxu2 %v149_v2  ;;  %229 = vmatpush.msra.mxu1 %v150_v3  ;;  %v137_v10 = vld [vmem:[#allocation8 + $0xf0] sm:$0xff]  ;;  %v134_v12 = vld [vmem:[#allocation8 + $0xd8] sm:$0xff]  ;;  %v135_v13 = vld [vmem:[#allocation8 + $0xe0] sm:$0xff] }
  0x1a   :  { %165 = vmatpush.msra.mxu0 %v146_v4  ;;  %1482 = vmatpush.msra.mxu3 %v147_v5  ;;  %v131_v14 = vld [vmem:[#allocation8 + $0xc0] sm:$0xff]  ;;  %v132_v15 = vld [vmem:[#allocation8 + $0xc8] sm:$0xff]  ;;  %v129_v17 = vld [vmem:[#allocation8 + $0xb0] sm:$0xff] }
  0x1b   :  { %1466 = vmatpush.msra.mxu2 %v146_v4  ;;  %230 = vmatpush.msra.mxu1 %v147_v5  ;;  %v128_v16 = vld [vmem:[#allocation8 + $0xa8] sm:$0xff]  ;;  %v125_v18 = vld [vmem:[#allocation8 + $0x90] sm:$0xff]  ;;  %v126_v19 = vld [vmem:[#allocation8 + $0x98] sm:$0xff] }
  0x1c   :  { %166 = vmatpush.msra.mxu0 %v143_v6  ;;  %1483 = vmatpush.msra.mxu3 %v144_v7  ;;  %v122_v20 = vld [vmem:[#allocation8 + $0x78] sm:$0xff]  ;;  %v123_v21 = vld [vmem:[#allocation8 + $0x80] sm:$0xff]  ;;  %v120_v23 = vld [vmem:[#allocation8 + $0x68] sm:$0xff] }
  0x1d   :  { %1467 = vmatpush.msra.mxu2 %v143_v6  ;;  %231 = vmatpush.msra.mxu1 %v144_v7  ;;  %v119_v22 = vld [vmem:[#allocation8 + $0x60] sm:$0xff]  ;;  %v116_v24 = vld [vmem:[#allocation8 + $0x48] sm:$0xff]  ;;  %v117_v25 = vld [vmem:[#allocation8 + $0x50] sm:$0xff] }
  0x1e   :  { %167 = vmatpush.msra.mxu0 %v140_v8  ;;  %1484 = vmatpush.msra.mxu3 %v141_v9  ;;  %v113_v26 = vld [vmem:[#allocation8 + $0x30] sm:$0xff]  ;;  %v114_v27 = vld [vmem:[#allocation8 + $0x38] sm:$0xff]  ;;  %v111_v29 = vld [vmem:[#allocation8 + $0x20] sm:$0xff] }
  0x1f   :  { %1468 = vmatpush.msra.mxu2 %v140_v8  ;;  %232 = vmatpush.msra.mxu1 %v141_v9  ;;  %v110_v28 = vld [vmem:[#allocation8 + $0x18] sm:$0xff]  ;;  %v107_v30 = vld [vmem:[#allocation8] sm:$0xff]  ;;  %v108_v31 = vld [vmem:[#allocation8 + $0x8] sm:$0xff] }
  0x20   :  { %168 = vmatpush.msra.mxu0 %v137_v10  ;;  %1485 = vmatpush.msra.mxu3 %v138_v11  ;;  %v1872_v32 = vld [vmem:[#allocation3] sm:$0xff]  ;;  %v419_v34 = vld [vmem:[#allocation9 + $0x168] sm:$0xff]  ;;  %v420_v35 = vld [vmem:[#allocation9 + $0x170] sm:$0xff] }
  0x21   :  { %1469 = vmatpush.msra.mxu2 %v137_v10  ;;  %233 = vmatpush.msra.mxu1 %v138_v11  ;;  %v1874_v33 = vld [vmem:[#allocation3 + $0x40] sm:$0xff]  ;;  %v416_v36 = vld [vmem:[#allocation9 + $0x150] sm:$0xff]  ;;  %v417_v37 = vld [vmem:[#allocation9 + $0x158] sm:$0xff] }
  0x22   :  { %169 = vmatpush.msra.mxu0 %v134_v12  ;;  %1486 = vmatpush.msra.mxu3 %v135_v13  ;;  %v413_v38 = vld [vmem:[#allocation9 + $0x138] sm:$0xff]  ;;  %v414_v39 = vld [vmem:[#allocation9 + $0x140] sm:$0xff]  ;;  %v411_v43 = vld [vmem:[#allocation9 + $0x128] sm:$0xff] }
  0x23   :  { %1470 = vmatpush.msra.mxu2 %v134_v12  ;;  %234 = vmatpush.msra.mxu1 %v135_v13  ;;  %v154_v40 = vld [vmem:[#allocation8 + $0x178] sm:$0xff]  ;;  %v410_v42 = vld [vmem:[#allocation9 + $0x120] sm:$0xff]  ;;  %v1880_v44 = vld [vmem:[#allocation3 + $0x8] sm:$0xff] }
  0x24   :  { %170 = vmatpush.msra.mxu0 %v131_v14  ;;  %1487 = vmatpush.msra.mxu3 %v132_v15  ;;  %v421_v41 = vld [vmem:[#allocation9 + $0x178] sm:$0xff]  ;;  %v1882_v45 = vld [vmem:[#allocation3 + $0x48] sm:$0xff]  ;;  %v408_v47 = vld [vmem:[#allocation9 + $0x110] sm:$0xff] }
  0x25   :  { %1471 = vmatpush.msra.mxu2 %v131_v14  ;;  %235 = vmatpush.msra.mxu1 %v132_v15  ;;  %v407_v46 = vld [vmem:[#allocation9 + $0x108] sm:$0xff]  ;;  %v151_v48 = vld [vmem:[#allocation8 + $0x160] sm:$0xff]  ;;  %v404_v49 = vld [vmem:[#allocation9 + $0xf0] sm:$0xff] }
  0x26   :  { %171 = vmatpush.msra.mxu0 %v128_v16  ;;  %1488 = vmatpush.msra.mxu3 %v129_v17  ;;  %v405_v50 = vld [vmem:[#allocation9 + $0xf8] sm:$0xff]  ;;  %v418_v51 = vld [vmem:[#allocation9 + $0x160] sm:$0xff]  ;;  %v148_v54 = vld [vmem:[#allocation8 + $0x148] sm:$0xff] }
  0x27   :  { %1472 = vmatpush.msra.mxu2 %v128_v16  ;;  %236 = vmatpush.msra.mxu1 %v129_v17  ;;  %v401_v52 = vld [vmem:[#allocation9 + $0xd8] sm:$0xff]  ;;  %v402_v53 = vld [vmem:[#allocation9 + $0xe0] sm:$0xff]  ;;  %v415_v55 = vld [vmem:[#allocation9 + $0x148] sm:$0xff] }
  0x28   :  { %172 = vmatpush.msra.mxu0 %v125_v18  ;;  %1489 = vmatpush.msra.mxu3 %v126_v19  ;;  %v398_v56 = vld [vmem:[#allocation9 + $0xc0] sm:$0xff]  ;;  %v399_v57 = vld [vmem:[#allocation9 + $0xc8] sm:$0xff]  ;;  %v1888_v58 = vld [vmem:[#allocation3 + $0x10] sm:$0xff] }
  0x29   :  { %1473 = vmatpush.msra.mxu2 %v125_v18  ;;  %237 = vmatpush.msra.mxu1 %v126_v19  ;;  %v1890_v59 = vld [vmem:[#allocation3 + $0x50] sm:$0xff]  ;;  %v395_v60 = vld [vmem:[#allocation9 + $0xa8] sm:$0xff]  ;;  %v142_v0 = vld [vmem:[#allocation8 + $0x118] sm:$0xff] }
  0x2a   :  { %173 = vmatpush.msra.mxu0 %v122_v20  ;;  %1490 = vmatpush.msra.mxu3 %v123_v21  ;;  %v145_v61 = vld [vmem:[#allocation8 + $0x130] sm:$0xff]  ;;  %v393_v2 = vld [vmem:[#allocation9 + $0x98] sm:$0xff]  ;;  %v139_v4 = vld [vmem:[#allocation8 + $0x100] sm:$0xff] }
  0x2b   :  { %1474 = vmatpush.msra.mxu2 %v122_v20  ;;  %238 = vmatpush.msra.mxu1 %v123_v21  ;;  %v396_v62 = vld [vmem:[#allocation9 + $0xb0] sm:$0xff]  ;;  %v389_v3 = vld [vmem:[#allocation9 + $0x78] sm:$0xff]  ;;  %v386_v6 = vld [vmem:[#allocation9 + $0x60] sm:$0xff] }
  0x2c   :  { %174 = vmatpush.msra.mxu0 %v119_v22  ;;  %1491 = vmatpush.msra.mxu3 %v120_v23  ;;  %v392_v63 = vld [vmem:[#allocation9 + $0x90] sm:$0xff]  ;;  %v409_v5 = vld [vmem:[#allocation9 + $0x118] sm:$0xff]  ;;  %v390_v7 = vld [vmem:[#allocation9 + $0x80] sm:$0xff] }
  0x2d   :  { %1475 = vmatpush.msra.mxu2 %v119_v22  ;;  %239 = vmatpush.msra.mxu1 %v120_v23  ;;  %v412_v1 = vld [vmem:[#allocation9 + $0x130] sm:$0xff]  ;;  %v1895_v8 = vld [vmem:[#allocation3 + $0x18] sm:$0xff]  ;;  %v383_v10 = vld [vmem:[#allocation9 + $0x48] sm:$0xff] }
  0x2e   :  { %175 = vmatpush.msra.mxu0 %v116_v24  ;;  %1492 = vmatpush.msra.mxu3 %v117_v25  ;;  %v1897_v9 = vld [vmem:[#allocation3 + $0x58] sm:$0xff]  ;;  %v387_v11 = vld [vmem:[#allocation9 + $0x68] sm:$0xff]  ;;  %v380_v12 = vld [vmem:[#allocation9 + $0x30] sm:$0xff] }
  0x2f   :  { %1476 = vmatpush.msra.mxu2 %v116_v24  ;;  %240 = vmatpush.msra.mxu1 %v117_v25  ;;  %v136_v13 = vld [vmem:[#allocation8 + $0xe8] sm:$0xff]  ;;  %v406_v14 = vld [vmem:[#allocation9 + $0x100] sm:$0xff]  ;;  %v384_v15 = vld [vmem:[#allocation9 + $0x50] sm:$0xff] }
  0x30   :  { %176 = vmatpush.msra.mxu0 %v113_v26  ;;  %1493 = vmatpush.msra.mxu3 %v114_v27  ;;  %v377_v16 = vld [vmem:[#allocation9 + $0x18] sm:$0xff]  ;;  %v403_v18 = vld [vmem:[#allocation9 + $0xe8] sm:$0xff]  ;;  %v133_v19 = vld [vmem:[#allocation8 + $0xd0] sm:$0xff] }
  0x31   :  { %1477 = vmatpush.msra.mxu2 %v113_v26  ;;  %241 = vmatpush.msra.mxu1 %v114_v27  ;;  %v381_v17 = vld [vmem:[#allocation9 + $0x38] sm:$0xff]  ;;  %v374_v20 = vld [vmem:[#allocation9] sm:$0xff]  ;;  %v375_v24 = vld [vmem:[#allocation9 + $0x8] sm:$0xff] }
  0x32   :  { %177 = vmatpush.msra.mxu0 %v110_v28  ;;  %1494 = vmatpush.msra.mxu3 %v111_v29  ;;  %v378_v21 = vld [vmem:[#allocation9 + $0x20] sm:$0xff]  ;;  %v130_v25 = vld [vmem:[#allocation8 + $0xb8] sm:$0xff]  ;;  %v400_v26 = vld [vmem:[#allocation9 + $0xd0] sm:$0xff] }
  0x33   :  { %1478 = vmatpush.msra.mxu2 %v110_v28  ;;  %242 = vmatpush.msra.mxu1 %v111_v29  ;;  %v1903_v22 = vld [vmem:[#allocation3 + $0x20] sm:$0xff]  ;;  %v397_v28 = vld [vmem:[#allocation9 + $0xb8] sm:$0xff]  ;;  %v124_v29 = vld [vmem:[#allocation8 + $0x88] sm:$0xff] }
  0x34   :  { %178 = vmatpush.msra.mxu0 %v107_v30  ;;  %1495 = vmatpush.msra.mxu3 %v108_v31  ;;  %v1905_v23 = vld [vmem:[#allocation3 + $0x60] sm:$0xff] }
  0x35   :  { %179 = vmatmul.f32.vlgmr.msra.gmra.mxu0 %v1872_v32  ;;  %268 = vmatmul.f32.vlgmr.msra.gmra.mxu3 %v1874_v33  ;;  %v127_v27 = vld [vmem:[#allocation8 + $0xa0] sm:$0xff] }
  0x36   :  { %430 = vmatpush.msrb.mxu3 %v419_v34  ;;  %495 = vmatpush.msrb.mxu0 %v420_v35  ;;  %v394_v34 = vld [vmem:[#allocation9 + $0xa0] sm:$0xff]  ;;  %v121_v35 = vld [vmem:[#allocation8 + $0x70] sm:$0xff] }
  0x37   :  { %1479 = vmatpush.msra.mxu2 %v107_v30  ;;  %243 = vmatpush.msra.mxu1 %v108_v31  ;;  %v1911_v30 = vld [vmem:[#allocation3 + $0x28] sm:$0xff] }
  0x38   :  { %431 = vmatpush.msrb.mxu3 %v416_v36  ;;  %496 = vmatpush.msrb.mxu0 %v417_v37  ;;  %v1913_v31 = vld [vmem:[#allocation3 + $0x68] sm:$0xff]  ;;  %v118_v37 = vld [vmem:[#allocation8 + $0x58] sm:$0xff] }
  0x39   :  { %203 = vmatmul.f32.vlgmr.msra.gmra.mxu2 %v1874_v33  ;;  %244 = vmatmul.f32.vlgmr.msra.gmra.mxu1 %v1872_v32  ;;  %v391_v36 = vld [vmem:[#allocation9 + $0x88] sm:$0xff] }
  0x3a   :  { %432 = vmatpush.msrb.mxu3 %v413_v38  ;;  %497 = vmatpush.msrb.mxu0 %v414_v39  ;;  %v97_v38 = vld [vmem:[#allocation3 + $0x30] sm:$0xff] }
  0x3b   :  { %293 = vmatpush.msrb.mxu2 %v154_v40  ;;  %560 = vmatpush.msrb.mxu1 %v421_v41  ;;  %v1919_v39 = vld [vmem:[#allocation3 + $0x70] sm:$0xff]  ;;  %v115_v41 = vld [vmem:[#allocation8 + $0x40] sm:$0xff] }
  0x3c   :  { %433 = vmatpush.msrb.mxu3 %v410_v42  ;;  %498 = vmatpush.msrb.mxu0 %v411_v43  ;;  %v388_v40 = vld [vmem:[#allocation9 + $0x70] sm:$0xff]  ;;  %v385_v42 = vld [vmem:[#allocation9 + $0x58] sm:$0xff]  ;;  %v112_v43 = vld [vmem:[#allocation8 + $0x28] sm:$0xff] }
  0x3d   :  { %182 = vmatmul.f32.gmra.mxu0 %v1880_v44  ;;  %271 = vmatmul.f32.gmra.mxu3 %v1882_v45 }
  0x3e   :  { %434 = vmatpush.msrb.mxu3 %v407_v46  ;;  %499 = vmatpush.msrb.mxu0 %v408_v47  ;;  %v98_v46 = vld [vmem:[#allocation3 + $0x38] sm:$0xff] }
  0x3f   :  { %294 = vmatpush.msrb.mxu2 %v151_v48  ;;  %561 = vmatpush.msrb.mxu1 %v418_v51  ;;  %v1924_v47 = vld [vmem:[#allocation3 + $0x78] sm:$0xff]  ;;  %v382_v48 = vld [vmem:[#allocation9 + $0x40] sm:$0xff] }
  0x40   :  { %435 = vmatpush.msrb.mxu3 %v404_v49  ;;  %500 = vmatpush.msrb.mxu0 %v405_v50  ;;  %v109_v49 = vld [vmem:[#allocation8 + $0x10] sm:$0xff]  ;;  %v379_v50 = vld [vmem:[#allocation9 + $0x28] sm:$0xff]  ;;  %v1928_v51 = vld [vmem:[#allocation6] sm:$0xff] }
  0x41   :  { %206 = vmatmul.f32.gmra.mxu2 %v1882_v45  ;;  %247 = vmatmul.f32.gmra.mxu1 %v1880_v44 }
  0x42   :  { %436 = vmatpush.msrb.mxu3 %v401_v52  ;;  %501 = vmatpush.msrb.mxu0 %v402_v53  ;;  %v376_v52 = vld [vmem:[#allocation9 + $0x10] sm:$0xff]  ;;  %v1933_v53 = vld [vmem:[#allocation6 + $0x8] sm:$0xff] }
  0x43   :  { %295 = vmatpush.msrb.mxu2 %v148_v54  ;;  %562 = vmatpush.msrb.mxu1 %v415_v55  ;;  %v1939_v54 = vld [vmem:[#allocation6 + $0x10] sm:$0xff]  ;;  %v363_v55 = vld [vmem:[#allocation6 + $0x28] sm:$0xff] }
  0x44   :  { %437 = vmatpush.msrb.mxu3 %v398_v56  ;;  %502 = vmatpush.msrb.mxu0 %v399_v57  ;;  %v364_v56 = vld [vmem:[#allocation6 + $0x30] sm:$0xff]  ;;  %v365_v57 = vld [vmem:[#allocation6 + $0x38] sm:$0xff] }
  0x45   :  { %185 = vmatmul.f32.gmra.mxu0 %v1888_v58  ;;  %274 = vmatmul.f32.gmra.mxu3 %v1890_v59 }
  0x46   :  { %438 = vmatpush.msrb.mxu3 %v395_v60  ;;  %296 = vmatpush.msrb.mxu2 %v145_v61  ;;  %v366_v61 = vld [vmem:[#allocation6 + $0x40] sm:$0xff] }
  0x47   :  { %503 = vmatpush.msrb.mxu0 %v396_v62  ;;  %563 = vmatpush.msrb.mxu1 %v412_v1 }
  0x48   :  { %439 = vmatpush.msrb.mxu3 %v392_v63  ;;  %297 = vmatpush.msrb.mxu2 %v142_v0 }
  0x49   :  { %209 = vmatmul.f32.gmra.mxu2 %v1890_v59  ;;  %504 = vmatpush.msrb.mxu0 %v393_v2 }
  0x4a   :  { %440 = vmatpush.msrb.mxu3 %v389_v3  ;;  %250 = vmatmul.f32.gmra.mxu1 %v1888_v58  ;;  %v367_v3 = vld [vmem:[#allocation6 + $0x48] sm:$0xff] }
  0x4b   :  { %298 = vmatpush.msrb.mxu2 %v139_v4  ;;  %564 = vmatpush.msrb.mxu1 %v409_v5 }
  0x4c   :  { %441 = vmatpush.msrb.mxu3 %v386_v6  ;;  %505 = vmatpush.msrb.mxu0 %v390_v7 }
  0x4d   :  { %188 = vmatmul.f32.gmra.mxu0 %v1895_v8  ;;  %277 = vmatmul.f32.gmra.mxu3 %v1897_v9 }
  0x4e   :  { %442 = vmatpush.msrb.mxu3 %v383_v10  ;;  %506 = vmatpush.msrb.mxu0 %v387_v11  ;;  %v368_v10 = vld [vmem:[#allocation6 + $0x50] sm:$0xff] }
  0x4f   :  { %299 = vmatpush.msrb.mxu2 %v136_v13  ;;  %565 = vmatpush.msrb.mxu1 %v406_v14 }
  0x50   :  { %443 = vmatpush.msrb.mxu3 %v380_v12  ;;  %507 = vmatpush.msrb.mxu0 %v384_v15  ;;  %v369_v15 = vld [vmem:[#allocation6 + $0x58] sm:$0xff] }
  0x51   :  { %212 = vmatmul.f32.gmra.mxu2 %v1897_v9  ;;  %566 = vmatpush.msrb.mxu1 %v403_v18 }
  0x52   :  { %444 = vmatpush.msrb.mxu3 %v377_v16  ;;  %508 = vmatpush.msrb.mxu0 %v381_v17 }
  0x53   :  { %253 = vmatmul.f32.gmra.mxu1 %v1895_v8  ;;  %300 = vmatpush.msrb.mxu2 %v133_v19 }
  0x54   :  { %445 = vmatpush.msrb.mxu3 %v374_v20  ;;  %509 = vmatpush.msrb.mxu0 %v378_v21  ;;  %v370_v20 = vld [vmem:[#allocation6 + $0x60] sm:$0xff] }
  0x55   :  { %191 = vmatmul.f32.gmra.mxu0 %v1903_v22  ;;  %280 = vmatmul.f32.gmra.mxu3 %v1905_v23 }
  0x56   :  { %510 = vmatpush.msrb.mxu0 %v375_v24  ;;  %301 = vmatpush.msrb.mxu2 %v130_v25 }
  0x57   :  { %567 = vmatpush.msrb.mxu1 %v400_v26  ;;  %v371_v26 = vld [vmem:[#allocation6 + $0x68] sm:$0xff] }
  0x58   :  { %302 = vmatpush.msrb.mxu2 %v127_v27 }
  0x59   :  { %215 = vmatmul.f32.gmra.mxu2 %v1905_v23  ;;  %568 = vmatpush.msrb.mxu1 %v397_v28 }
  0x5a   :  { %303 = vmatpush.msrb.mxu2 %v124_v29 }
  0x5b   :  { %256 = vmatmul.f32.gmra.mxu1 %v1903_v22 }
  0x5c   :  { %569 = vmatpush.msrb.mxu1 %v394_v34  ;;  %304 = vmatpush.msrb.mxu2 %v121_v35 }
  0x5d   :  { %194 = vmatmul.f32.gmra.mxu0 %v1911_v30  ;;  %283 = vmatmul.f32.gmra.mxu3 %v1913_v31 }
  0x5e   :  { %570 = vmatpush.msrb.mxu1 %v391_v36  ;;  %305 = vmatpush.msrb.mxu2 %v118_v37 }
  0x60   :  { %571 = vmatpush.msrb.mxu1 %v388_v40  ;;  %306 = vmatpush.msrb.mxu2 %v115_v41  ;;  %v422_v40 = vld [vmem:[%s2926_s5] sm:$0x7] }
  0x61   :  { %218 = vmatmul.f32.gmra.mxu2 %v1913_v31 }
  0x62   :  { %572 = vmatpush.msrb.mxu1 %v385_v42  ;;  %307 = vmatpush.msrb.mxu2 %v112_v43  ;;  %v2036_v42 = vperm.slane %v422_v40, 1 }
  0x63   :  { %259 = vmatmul.f32.gmra.mxu1 %v1911_v30 }
  0x64   :  { %573 = vmatpush.msrb.mxu1 %v382_v48  ;;  %308 = vmatpush.msrb.mxu2 %v109_v49 }
  0x65   :  { %197 = vmatmul.f32.gmra.mxu0 %v97_v38  ;;  %286 = vmatmul.f32.gmra.mxu3 %v1919_v39 }
  0x66   :  { %574 = vmatpush.msrb.mxu1 %v379_v50 }
  0x68   :  { %575 = vmatpush.msrb.mxu1 %v376_v52 }
  0x69   :  { %221 = vmatmul.f32.gmra.mxu2 %v1919_v39 }
  0x6b   :  { %262 = vmatmul.f32.gmra.mxu1 %v97_v38 }
  0x6d   :  { %200 = vmatmul.f32.gmra.mxu0 %v98_v46  ;;  %289 = vmatmul.f32.gmra.mxu3 %v1924_v47 }
  0x71   :  { %224 = vmatmul.f32.gmra.mxu2 %v1924_v47 }
  0x73   :  { %265 = vmatmul.f32.gmra.mxu1 %v98_v46 }
  0x75   :  { %446 = vmatmul.f32.vlgmr.msrb.gmra.mxu3 %v1928_v51  ;;  %511 = vmatmul.f32.vlgmr.msrb.gmra.mxu0 %v1928_v51 }
  0x79   :  { %309 = vmatmul.f32.vlgmr.msrb.gmra.mxu2 %v1872_v32  ;;  %v1945_v32 = vld [vmem:[#allocation6 + $0x18] sm:$0xff] }
  0x7b   :  { %576 = vmatmul.f32.vlgmr.msrb.gmra.mxu1 %v1928_v51 }
  0x7d   :  { %449 = vmatmul.f32.gmra.mxu3 %v1933_v53  ;;  %514 = vmatmul.f32.gmra.mxu0 %v1933_v53 }
  0x81   :  { %312 = vmatmul.f32.gmra.mxu2 %v1880_v44  ;;  %v362_v44 = vld [vmem:[#allocation6 + $0x20] sm:$0xff] }
  0x83   :  { %579 = vmatmul.f32.gmra.mxu1 %v1933_v53 }
  0x85   :  { %452 = vmatmul.f32.gmra.mxu3 %v1939_v54  ;;  %517 = vmatmul.f32.gmra.mxu0 %v1939_v54 }
  0x89   :  { %315 = vmatmul.f32.gmra.mxu2 %v1888_v58  ;;  %v1957_v58 = vld [vmem:[%s2925_s4] sm:$0x7] }
  0x8a   :  { %v1962_v62 = vperm.slane %v1957_v58, 1 }
  0x8b   :  { %582 = vmatmul.f32.gmra.mxu1 %v1939_v54 }
  0x8d   :  { %455 = vmatmul.f32.gmra.mxu3 %v1945_v32  ;;  %520 = vmatmul.f32.gmra.mxu0 %v1945_v32 }
  0x91   :  { %318 = vmatmul.f32.gmra.mxu2 %v1895_v8 }
  0x93   :  { %585 = vmatmul.f32.gmra.mxu1 %v1945_v32 }
  0x95   :  { %458 = vmatmul.f32.gmra.mxu3 %v362_v44  ;;  %523 = vmatmul.f32.gmra.mxu0 %v362_v44 }
  0x99   :  { %321 = vmatmul.f32.gmra.mxu2 %v1903_v22 }
  0x9b   :  { %588 = vmatmul.f32.gmra.mxu1 %v362_v44  ;;  %v2049_v44 = vperm.slane %v1957_v58, 0 }
  0x9d   :  { %461 = vmatmul.f32.gmra.mxu3 %v363_v55  ;;  %526 = vmatmul.f32.gmra.mxu0 %v363_v55 }
  0xa1   :  { %324 = vmatmul.f32.gmra.mxu2 %v1911_v30  ;;  %v372_v30 = vld [vmem:[#allocation6 + $0x70] sm:$0xff] }
  0xa3   :  { %591 = vmatmul.f32.gmra.mxu1 %v363_v55 }
  0xa5   :  { %464 = vmatmul.f32.gmra.mxu3 %v364_v56  ;;  %529 = vmatmul.f32.gmra.mxu0 %v364_v56 }
  0xa9   :  { %327 = vmatmul.f32.gmra.mxu2 %v97_v38 }
  0xab   :  { %594 = vmatmul.f32.gmra.mxu1 %v364_v56  ;;  %v2051_v56 = vperm.slane %v422_v40, 0 }
  0xad   :  { %467 = vmatmul.f32.gmra.mxu3 %v365_v57  ;;  %532 = vmatmul.f32.gmra.mxu0 %v365_v57 }
  0xb1   :  { %330 = vmatmul.f32.gmra.mxu2 %v98_v46 }
  0xb2   :  { %v1959_v60 = vpop.f32.mrf.mxu0 }
  0xb3   :  { %597 = vmatmul.f32.gmra.mxu1 %v365_v57 }
  0xb5   :  { %470 = vmatmul.f32.gmra.mxu3 %v366_v61  ;;  %535 = vmatmul.f32.gmra.mxu0 %v366_v61 }
  0xb6   :  { %v1964_v63 = vpop.f32.mrf.mxu1 }
  0xb7   :  { %v246_v50 = vadd.f32 %v1964_v63, %v1962_v62 }
  0xb8   :  { %v269_v0 = vpop.f32.mrf.mxu3 }
  0xb9   :  { %v1967_v1 = vadd.f32 %v269_v0, %v1962_v62  ;;  %333 = vmatmul.f32.gmra.mxu2 %v1874_v33  ;;  %v181_v0 = vadd.f32 %v1959_v60, %v2049_v44 }
  0xba   :  { %v1970_v2 = vpop.f32.mrf.mxu0 }
  0xbb   :  { %600 = vmatmul.f32.gmra.mxu1 %v366_v61  ;;  %v184_v60 = vadd.f32 %v1970_v2, %v2049_v44 }
  0xbc   :  { %v1972_v4 = vpop.f32.mrf.mxu2 }
  0xbd   :  { %473 = vmatmul.f32.gmra.mxu3 %v367_v3  ;;  %538 = vmatmul.f32.gmra.mxu0 %v367_v3 }
  0xbe   :  { %v1974_v5 = vpop.f32.mrf.mxu1 }
  0xc0   :  { %v272_v6 = vpop.f32.mrf.mxu3 }
  0xc1   :  { %v1977_v7 = vadd.f32 %v272_v6, %v1962_v62  ;;  %336 = vmatmul.f32.gmra.mxu2 %v1882_v45  ;;  %v249_v6 = vadd.f32 %v1974_v5, %v1962_v62 }
  0xc2   :  { %v1980_v8 = vpop.f32.mrf.mxu0 }
  0xc3   :  { %603 = vmatmul.f32.gmra.mxu1 %v367_v3 }
  0xc4   :  { %v1982_v33 = vpop.f32.mrf.mxu2 }
  0xc5   :  { %476 = vmatmul.f32.gmra.mxu3 %v368_v10  ;;  %541 = vmatmul.f32.gmra.mxu0 %v368_v10 }
  0xc7   :  { %v1984_v11 = vpop.f32.mrf.mxu1 }
  0xc8   :  { %v275_v12 = vpop.f32.mrf.mxu3 }
  0xc9   :  { %v1987_v13 = vadd.f32 %v275_v12, %v1962_v62  ;;  %339 = vmatmul.f32.gmra.mxu2 %v1890_v59 }
  0xca   :  { %v1990_v14 = vpop.f32.mrf.mxu0 }
  0xcb   :  { %606 = vmatmul.f32.gmra.mxu1 %v368_v10 }
  0xcc   :  { %v1992_v45 = vpop.f32.mrf.mxu2 }
  0xcd   :  { %479 = vmatmul.f32.gmra.mxu3 %v369_v15  ;;  %544 = vmatmul.f32.gmra.mxu0 %v369_v15 }
  0xd0   :  { %v278_v16 = vpop.f32.mrf.mxu3  ;;  %v1994_v17 = vpop.f32.mrf.mxu1 }
  0xd1   :  { %v1997_v18 = vadd.f32 %v278_v16, %v1962_v62  ;;  %342 = vmatmul.f32.gmra.mxu2 %v1897_v9 }
  0xd2   :  { %v2000_v19 = vpop.f32.mrf.mxu0 }
  0xd3   :  { %609 = vmatmul.f32.gmra.mxu1 %v369_v15 }
  0xd4   :  { %v2002_v59 = vpop.f32.mrf.mxu2 }
  0xd5   :  { %482 = vmatmul.f32.gmra.mxu3 %v370_v20  ;;  %547 = vmatmul.f32.gmra.mxu0 %v370_v20 }
  0xd8   :  { %v281_v21 = vpop.f32.mrf.mxu3  ;;  %v2004_v22 = vpop.f32.mrf.mxu1 }
  0xd9   :  { %v2007_v24 = vadd.f32 %v281_v21, %v1962_v62  ;;  %345 = vmatmul.f32.gmra.mxu2 %v1905_v23 }
  0xda   :  { %v2010_v25 = vpop.f32.mrf.mxu0 }
  0xdb   :  { %2929 = vst [vmem:[#allocation16_spill] sm:$0xff] %v2007_v24  ;;  %612 = vmatmul.f32.gmra.mxu1 %v370_v20 }
  0xdc   :  { %v2020_v34 = vpop.f32.mrf.mxu2 }
  0xdd   :  { %485 = vmatmul.f32.gmra.mxu3 %v371_v26  ;;  %550 = vmatmul.f32.gmra.mxu0 %v371_v26 }
  0xe0   :  { %v284_v9 = vpop.f32.mrf.mxu3  ;;  %v2012_v27 = vpop.f32.mrf.mxu1 }
  0xe1   :  { %v2015_v28 = vadd.f32 %v284_v9, %v1962_v62  ;;  %348 = vmatmul.f32.gmra.mxu2 %v1913_v31  ;;  %v373_v31 = vld [vmem:[#allocation6 + $0x78] sm:$0xff] }
  0xe2   :  { %v2018_v29 = vpop.f32.mrf.mxu0 }
  0xe3   :  { %2930 = vst [vmem:[#allocation17_spill] sm:$0xff] %v2015_v28  ;;  %615 = vmatmul.f32.gmra.mxu1 %v371_v26 }
  0xe4   :  { %v2034_v41 = vpop.f32.mrf.mxu2 }
  0xe5   :  { %488 = vmatmul.f32.gmra.mxu3 %v372_v30  ;;  %553 = vmatmul.f32.gmra.mxu0 %v372_v30 }
  0xe8   :  { %v287_v23 = vpop.f32.mrf.mxu3  ;;  %v263_v35 = vpop.f32.mrf.mxu1 }
  0xe9   :  { %v2023_v36 = vadd.f32 %v287_v23, %v1962_v62  ;;  %351 = vmatmul.f32.gmra.mxu2 %v1919_v39  ;;  %v2027_v37 = vadd.f32 %v263_v35, %v1962_v62  ;;  %v252_v35 = vadd.f32 %v1984_v11, %v1962_v62  ;;  %v2080_v11 = vadd.f32 %v1972_v4, %v2049_v44 }
  0xea   :  { %v2029_v38 = vpop.f32.mrf.mxu0 }
  0xeb   :  { %2931 = vst [vmem:[#allocation18_spill] sm:$0xff] %v2023_v36  ;;  %618 = vmatmul.f32.gmra.mxu1 %v372_v30 }
  0xec   :  { %v2053_v57 = vpop.f32.mrf.mxu2 }
  0xed   :  { %491 = vmatmul.f32.gmra.mxu3 %v373_v31  ;;  %556 = vmatmul.f32.gmra.mxu0 %v373_v31 }
  0xf0   :  { %v290_v43 = vpop.f32.mrf.mxu3  ;;  %v266_v46 = vpop.f32.mrf.mxu1 }
  0xf1   :  { %v2039_v39 = vadd.f32 %v290_v43, %v1962_v62  ;;  %354 = vmatmul.f32.gmra.mxu2 %v1924_v47  ;;  %v2043_v48 = vadd.f32 %v266_v46, %v1962_v62 }
  0xf2   :  { %v512_v49 = vpop.f32.mrf.mxu0 }
  0xf3   :  { %2932 = vst [vmem:[#allocation19_spill] sm:$0xff] %v2039_v39  ;;  %v513_v52 = vadd.f32 %v512_v49, %v2036_v42  ;;  %621 = vmatmul.f32.gmra.mxu1 %v373_v31 }
  0xf4   :  { %v2063_v30 = vpop.f32.mrf.mxu2 }
  0xf5   :  { %v945_v55 = vadd.f32 %v513_v52, %v246_v50 }
  0xf7   :  { %v1448_v61 = vmul.f32 -1.442695, %v945_v55 }
  0xf8   :  { %v447_v47 = vpop.f32.mrf.mxu3  ;;  %v577_v46 = vpop.f32.mrf.mxu1 }
  0xf9   :  { %1505 = vpow2.f32 %v1448_v61  ;;  %v448_v3 = vadd.f32 %v447_v47, %v2051_v56 }
  0xfa   :  { %v515_v63 = vpop.f32.mrf.mxu0 }
  0xfb   :  { %v625_v10 = vadd.f32 %v448_v3, %v181_v0  ;;  %v516_v12 = vadd.f32 %v515_v63, %v2036_v42  ;;  %v187_v0 = vadd.f32 %v1980_v8, %v2049_v44  ;;  %v190_v8 = vadd.f32 %v1990_v14, %v2049_v44 }
  0xfd   :  { %v1432_v15 = vmul.f32 -1.442695, %v625_v10  ;;  %v946_v16 = vadd.f32 %v516_v12, %v249_v6  ;;  %v2087_v6 = vadd.f32 %v1982_v33, %v2049_v44  ;;  %v2090_v12 = vperm.slane %v422_v40, 2 }
  0xfe   :  { %v2102_v33 = vadd.f32 %v1992_v45, %v2049_v44  ;;  %v255_v40 = vadd.f32 %v1994_v17, %v1962_v62  ;;  %v258_v45 = vadd.f32 %v2004_v22, %v1962_v62  ;;  %v2123_v17 = vadd.f32 %v2012_v27, %v1962_v62 }
  0xff   :  { %v1506_v20 = vpop.eup %1505  ;;  %1507 = vpow2.f32 %v1432_v15  ;;  %v1449_v21 = vmul.f32 -1.442695, %v946_v16  ;;  %v2098_v16 = vperm.slane %v1957_v58, 2  ;;  %v2117_v58 = vadd.f32 %v2002_v59, %v2049_v44 }
 0x100   :  { %v2061_v26 = vadd.f32 1.0, %v1506_v20  ;;  %v450_v9 = vpop.f32.mrf.mxu3  ;;  %v310_v20 = vpop.f32.mrf.mxu2 }
 0x101   :  { %1509 = vpow2.f32 %v1449_v21  ;;  %v451_v23 = vadd.f32 %v450_v9, %v2051_v56  ;;  %v2109_v9 = vadd.f32 %v2000_v19, %v2049_v44  ;;  %v578_v19 = vadd.f32 %v577_v46, %v2090_v12 }
 0x102   :  { %1511 = vrcp.f32 %v2061_v26  ;;  %v518_v5 = vpop.f32.mrf.mxu0  ;;  %v2130_v59 = vadd.f32 %v310_v20, %v2098_v16  ;;  %v1034_v27 = vand.u32 2147483647, %v2061_v26  ;;  %vm1030_vm0 = vweird.f32 %v2061_v26 }
 0x103   :  { %v626_v31 = vadd.f32 %v451_v23, %v184_v60  ;;  %v519_v43 = vadd.f32 %v518_v5, %v2036_v42  ;;  %v2113_v60 = vadd.f32 %v2010_v25, %v2049_v44  ;;  %v1036_v25 = vand.u32 2147483648, %v2061_v26 }
 0x104   :  { %vm2157_vm4 = vcmp.eq.f32.partialorder %v1034_v27, 8.507059e+37 }
 0x105   :  { %v1508_v49 = vpop.eup %1507  ;;  %v1433_v50 = vmul.f32 -1.442695, %v626_v31  ;;  %v947_v52 = vadd.f32 %v519_v43, %v252_v35 }
 0x106   :  { %v2072_v55 = vadd.f32 1.0, %v1508_v49 }
 0x107   :  { %v1510_v61 = vpop.eup %1509  ;;  %1513 = vpow2.f32 %v1433_v50  ;;  %v1450_v2 = vmul.f32 -1.442695, %v947_v52  ;;  %v580_v50 = vpop.f32.mrf.mxu1 }
 0x108   :  { %v2074_v47 = vpop.eup %1511  ;;  %1515 = vrcp.f32 %v2072_v55  ;;  %v2083_v3 = vadd.f32 1.0, %v1510_v61  ;;  %v453_v63 = vpop.f32.mrf.mxu3  ;;  %v714_v62 = vand.u32 2147483647, %v2072_v55  ;;  %v2146_v20 = vadd.f32 %v580_v50, %v2090_v12 }
 0x109   :  { %1517 = vpow2.f32 %v1450_v2  ;;  %v454_v10 = vadd.f32 %v453_v63, %v2051_v56  ;;  %v1026_v4 = vmul.f32 %v2074_v47, %v2061_v26  ;;  %v716_v63 = vand.u32 2147483648, %v2072_v55 }
 0x10a   :  { %1519 = vrcp.f32 %v2083_v3  ;;  %v521_v15 = vpop.f32.mrf.mxu0  ;;  %vm710_vm1 = vweird.f32 %v2072_v55  ;;  %vm2153_vm3 = vcmp.eq.f32.partialorder %v714_v62, 8.507059e+37  ;;  %vm1031_vm6 = vweird.f32 %v2074_v47 }
 0x10b   :  { %v627_v21 = vadd.f32 %v454_v10, %v187_v0  ;;  %v522_v14 = vadd.f32 %v521_v15, %v2036_v42  ;;  %v1027_v43 = vsub.f32 1.0, %v1026_v4  ;;  %v717_v50 = vor.u32 1.1754944e-38, %v716_v63  ;;  %vm2188_vm8 = vmor %vm1030_vm0, %vm1031_vm6 }
 0x10c   :  { %vm1045_vm7 = vweird.f32 %v2083_v3 }
 0x10d   :  { %v1514_v23 = vpop.eup %1513  ;;  %v1434_v5 = vmul.f32 -1.442695, %v627_v21  ;;  %v948_v35 = vadd.f32 %v522_v14, %v255_v40  ;;  %v1028_v40 = vmul.f32 %v2074_v47, %v1027_v43  ;;  %v1037_v14 = vor.u32 1.1754944e-38, %v1036_v25  ;;  %v313_v43 = vpop.f32.mrf.mxu2 }
 0x10e   :  { %v1516_v31 = vpop.eup %1515  ;;  %v2127_v49 = vadd.f32 1.0, %v1514_v23  ;;  %v2175_v63 = vadd.f32 %v313_v43, %v2098_v16 }
 0x10f   :  { %v1518_v22 = vpop.eup %1517  ;;  %1521 = vpow2.f32 %v1434_v5  ;;  %v706_v52 = vmul.f32 %v1516_v31, %v2072_v55  ;;  %v1451_v2 = vmul.f32 -1.442695, %v948_v35  ;;  %vm711_vm2 = vweird.f32 %v1516_v31 }
 0x110   :  { %v2135_v61 = vpop.eup %1519  ;;  %1523 = vrcp.f32 %v2127_v49  ;;  %v2139_v46 = vadd.f32 1.0, %v1518_v22  ;;  %v456_v0 = vpop.f32.mrf.mxu3  ;;  %v1051_v22 = vand.u32 2147483648, %v2083_v3  ;;  %vm712_vm5 = vmor %vm710_vm1, %vm711_vm2  ;;  %v1029_v62 = vadd.f32 %v2074_v47, %v1028_v40 }
 0x111   :  { %v1041_v10 = vmul.f32 %v2135_v61, %v2083_v3  ;;  %v457_v4 = vadd.f32 %v456_v0, %v2051_v56  ;;  %v707_v15 = vsub.f32 1.0, %v706_v52  ;;  %vm725_vm9 = vweird.f32 %v2127_v49 }
 0x112   :  { %1525 = vrcp.f32 %v2139_v46  ;;  %v524_v21 = vpop.f32.mrf.mxu0  ;;  %v729_v26 = vand.u32 2147483647, %v2127_v49  ;;  %vm1046_vm11 = vweird.f32 %v2135_v61 }
 0x113   :  { %v628_v23 = vadd.f32 %v457_v4, %v190_v8  ;;  %v525_v5 = vadd.f32 %v524_v21, %v2036_v42  ;;  %v708_v35 = vmul.f32 %v1516_v31, %v707_v15  ;;  %1527 = vpow2.f32 %v1451_v2  ;;  %vm2223_vm14 = vmor %vm1045_vm7, %vm1046_vm11 }
 0x114   :  { %v1042_v39 = vsub.f32 1.0, %v1041_v10  ;;  %v2170_v2 = vstv %s2927_s6  ;;  %v1049_v21 = vand.u32 2147483647, %v2083_v3  ;;  %vm730_vm13 = vcmp.eq.f32.partialorder %v729_v26, 8.507059e+37  ;;  %s1813_s6 = smov [#allocation11]  }
 0x115   :  { %v1522_v0 = vpop.eup %1521  ;;  %v1435_v36 = vmul.f32 -1.442695, %v628_v23  ;;  %v949_v28 = vadd.f32 %v525_v5, %v258_v45  ;;  %v709_v24 = vadd.f32 %v1516_v31, %v708_v35  ;;  %s1415_s25 = sshll.u32 %s1813_s6, 4  ;;  %s1416_s25 = int_to_ptr.vmem [resolvable:$true] %s1415_s25 }
 0x116   :  { %v1524_v25 = vpop.eup %1523  ;;  %v2161_v4 = vadd.f32 1.0, %v1522_v0  ;;  %v1043_v23 = vmul.f32 %v2135_v61, %v1042_v39  ;;  %v1033_v39 = vsel %vm2188_vm8, %v2074_v47, %v1029_v62  ;;  %v731_v0 = vand.u32 2147483648, %v2127_v49 }
 0x117   :  { %1529 = vpow2.f32 %v1435_v36  ;;  %v713_v45 = vsel %vm712_vm5, %v1516_v31, %v709_v24  ;;  %v721_v27 = vmul.f32 %v1524_v25, %v2127_v49  ;;  %v1452_v10 = vmul.f32 -1.442695, %v949_v28 }
 0x118   :  { %v2177_v55 = vpop.eup %1525  ;;  %1531 = vrcp.f32 %v2161_v4  ;;  %v718_v15 = vsel %vm2153_vm3, %v717_v50, %v713_v45  ;;  %v459_v40 = vpop.f32.mrf.mxu3  ;;  %vm726_vm10 = vweird.f32 %v1524_v25  ;;  %v1044_v62 = vadd.f32 %v2135_v61, %v1043_v23 }
 0x119   :  { %v1265_v36 = vmul.f32 %v718_v15, %v578_v19  ;;  %v460_v31 = vadd.f32 %v459_v40, %v2051_v56  ;;  %v1528_v28 = vpop.eup %1527  ;;  %v1056_v5 = vmul.f32 %v2177_v55, %v2139_v46  ;;  %v722_v35 = vsub.f32 1.0, %v721_v27  ;;  %vm727_vm12 = vmor %vm725_vm9, %vm726_vm10 }
 0x11a   :  { %v527_v19 = vpop.f32.mrf.mxu0  ;;  %1533 = vpow2.f32 %v1452_v10  ;;  %v2205_v40 = vadd.f32 1.0, %v1528_v28  ;;  %v1038_v27 = vsel %vm2157_vm4, %v1037_v14, %v1033_v39  ;;  %v1052_v28 = vor.u32 1.1754944e-38, %v1051_v22 }
 0x11b   :  { %v1281_v52 = vadd.f32 %v1265_v36, %v2130_v59  ;;  %v629_v50 = vadd.f32 %v460_v31, %v2109_v9  ;;  %v528_v43 = vadd.f32 %v527_v19, %v2036_v42  ;;  %v723_v45 = vmul.f32 %v1524_v25, %v722_v35 }
 0x11c   :  { %v1057_v9 = vsub.f32 1.0, %v1056_v5  ;;  %v732_v31 = vor.u32 1.1754944e-38, %v731_v0  ;;  %vm2227_vm15 = vcmp.eq.f32.partialorder %v1049_v21, 8.507059e+37  ;;  %v1313_v22 = vsub.f32 1.0, %v1038_v27 }
 0x11d   :  { %v1530_v15 = vpop.eup %1529  ;;  %1535 = vtanh.f32 %v1281_v52  ;;  %v950_v47 = vadd.f32 %v528_v43, %v2123_v17  ;;  %v1436_v36 = vmul.f32 -1.442695, %v629_v50  ;;  %v724_v10 = vadd.f32 %v1524_v25, %v723_v45 }
 0x11e   :  { %v2209_v59 = vpop.eup %1531  ;;  %v2213_v24 = vadd.f32 1.0, %v1530_v15  ;;  %1537 = vrcp.f32 %v2205_v40  ;;  %v1058_v3 = vmul.f32 %v2177_v55, %v1057_v9  ;;  %v1345_v35 = vmul.f32 %v1038_v27, %v1928_v51 }
 0x11f   :  { %v736_v17 = vmul.f32 %v2209_v59, %v2161_v4  ;;  %v1453_v19 = vmul.f32 -1.442695, %v950_v47  ;;  %v728_v23 = vsel %vm727_vm12, %v1524_v25, %v724_v10  ;;  %v1048_v25 = vsel %vm2223_vm14, %v2135_v61, %v1044_v62  ;;  %v583_v47 = vpop.f32.mrf.mxu1 }
 0x120   :  { %v462_v49 = vpop.f32.mrf.mxu3  ;;  %v733_v5 = vsel %vm730_vm13, %v732_v31, %v728_v23  ;;  %v1534_v39 = vpop.eup %1533  ;;  %1539 = vpow2.f32 %v1436_v36  ;;  %v1053_v61 = vsel %vm2227_vm15, %v1052_v28, %v1048_v25  ;;  %vm741_vm0 = vweird.f32 %v2209_v59 }
 0x121   :  { %v1266_v21 = vmul.f32 %v733_v5, %v2146_v20  ;;  %1541 = vrcp.f32 %v2213_v24  ;;  %v463_v50 = vadd.f32 %v462_v49, %v2051_v56  ;;  %v737_v0 = vsub.f32 1.0, %v736_v17 }
 0x122   :  { %v530_v26 = vpop.f32.mrf.mxu0  ;;  %1543 = vpow2.f32 %v1453_v19  ;;  %v2248_v9 = vadd.f32 1.0, %v1534_v39  ;;  %v744_v36 = vand.u32 2147483647, %v2161_v4  ;;  %vm740_vm1 = vweird.f32 %v2161_v4 }
 0x123   :  { %v1536_v52 = vpop.eup %1535  ;;  %v531_v43 = vadd.f32 %v530_v26, %v2036_v42  ;;  %v1282_v15 = vadd.f32 %v1266_v21, %v2175_v63  ;;  %v630_v51 = vadd.f32 %v463_v50, %v2113_v60  ;;  %v738_v62 = vmul.f32 %v2209_v59, %v737_v0  ;;  %v316_v60 = vpop.f32.mrf.mxu2  ;;  %vm742_vm2 = vmor %vm740_vm1, %vm741_vm0 }
 0x124   :  { %v1329_v45 = vmul.f32 %v1536_v52, %v1313_v22  ;;  %v2251_v10 = vpop.eup %1537  ;;  %v199_v17 = vadd.f32 %v2018_v29, %v2049_v44  ;;  %v584_v14 = vadd.f32 %v583_v47, %v2090_v12  ;;  %vm1060_vm3 = vweird.f32 %v2139_v46 }
 0x125   :  { %v951_v20 = vadd.f32 %v531_v43, %v2027_v37  ;;  %1545 = vtanh.f32 %v1282_v15  ;;  %v1437_v31 = vmul.f32 -1.442695, %v630_v51  ;;  %v739_v63 = vadd.f32 %v2209_v59, %v738_v62 }
 0x126   :  { %v1361_v27 = vadd.f32 %v1345_v35, %v1329_v45  ;;  %v746_v37 = vand.u32 2147483648, %v2161_v4  ;;  %v1540_v28 = vpop.eup %1539  ;;  %v1314_v49 = vsub.f32 1.0, %v1053_v61  ;;  %v1071_v29 = vmul.f32 %v2251_v10, %v2205_v40 }
 0x127   :  { %v1454_v23 = vmul.f32 -1.442695, %v951_v20  ;;  %v2262_v8 = vpop.eup %1541  ;;  %v743_v4 = vsel %vm742_vm2, %v2209_v59, %v739_v63  ;;  %1547 = vrcp.f32 %v2248_v9  ;;  %vm745_vm4 = vcmp.eq.f32.partialorder %v744_v36, 8.507059e+37 }
 0x128   :  { %v1379_v19 = vmul.f32 %v2170_v2, %v1361_v27  ;;  %v747_v22 = vor.u32 1.1754944e-38, %v746_v37  ;;  %v465_v5 = vpop.f32.mrf.mxu3  ;;  %v1544_v25 = vpop.eup %1543  ;;  %v317_v39 = vadd.f32 %v316_v60, %v2098_v16  ;;  %1549 = vpow2.f32 %v1437_v31 }
 0x129   :  { %v1059_v21 = vadd.f32 %v2177_v55, %v1058_v3  ;;  %vm1061_vm5 = vweird.f32 %v2177_v55  ;;  %v1066_v52 = vand.u32 2147483648, %v2139_v46  ;;  %1551 = vpow2.f32 %v1454_v23 }
 0x12a   :  { %1395 = vst [vmem:[#allocation11] sm:$0xff] %v1379_v19  ;;  %v748_v35 = vsel %vm745_vm4, %v747_v22, %v743_v4  ;;  %v533_v26 = vpop.f32.mrf.mxu0  ;;  %v466_v43 = vadd.f32 %v465_v5, %v2051_v56  ;;  %v2274_v0 = vadd.f32 1.0, %v1540_v28  ;;  %v1346_v15 = vmul.f32 %v1053_v61, %v1933_v53  ;;  %vm2280_vm6 = vmor %vm1060_vm3, %vm1061_vm5  ;;  %v586_v19 = vpop.f32.mrf.mxu1 }
 0x12b   :  { %v1546_v59 = vpop.eup %1545  ;;  %v1267_v50 = vmul.f32 %v748_v35, %v584_v14  ;;  %v1064_v51 = vand.u32 2147483647, %v2139_v46  ;;  %v1072_v20 = vsub.f32 1.0, %v1071_v29  ;;  %v534_v27 = vadd.f32 %v533_v26, %v2036_v42 }
 0x12c   :  { %v1330_v45 = vmul.f32 %v1546_v59, %v1314_v49  ;;  %v631_v62 = vadd.f32 %v466_v43, %v199_v17  ;;  %v2285_v36 = vadd.f32 1.0, %v1544_v25  ;;  %v1063_v53 = vsel %vm2280_vm6, %v2177_v55, %v1059_v21 }
 0x12d   :  { %v1283_v47 = vadd.f32 %v1267_v50, %v317_v39  ;;  %v751_v61 = vmul.f32 %v2262_v8, %v2213_v24  ;;  %v2292_v63 = vpop.eup %1547  ;;  %v202_v46 = vadd.f32 %v2029_v38, %v2049_v44  ;;  %v2298_v37 = vadd.f32 %v2020_v34, %v2049_v44 }
 0x12e   :  { %v1362_v31 = vadd.f32 %v1346_v15, %v1330_v45  ;;  %v1067_v60 = vor.u32 1.1754944e-38, %v1066_v52  ;;  %v1550_v28 = vpop.eup %1549  ;;  %v1081_v17 = vand.u32 2147483648, %v2205_v40  ;;  %vm1065_vm7 = vcmp.eq.f32.partialorder %v1064_v51, 8.507059e+37 }
 0x12f   :  { %1553 = vtanh.f32 %v1283_v47  ;;  %v1552_v23 = vpop.eup %1551  ;;  %v1438_v49 = vmul.f32 -1.442695, %v631_v62  ;;  %v952_v38 = vadd.f32 %v534_v27, %v2043_v48  ;;  %v752_v4 = vsub.f32 1.0, %v751_v61  ;;  %v319_v48 = vpop.f32.mrf.mxu2 }
 0x130   :  { %1555 = vrcp.f32 %v2274_v0  ;;  %v1380_v55 = vmul.f32 %v2170_v2, %v1362_v31  ;;  %v1068_v14 = vsel %vm1065_vm7, %v1067_v60, %v1063_v53  ;;  %v1073_v34 = vmul.f32 %v2251_v10, %v1072_v20  ;;  %v468_v52 = vpop.f32.mrf.mxu3 }
 0x131   :  { %v1086_v22 = vmul.f32 %v2292_v63, %v2248_v9  ;;  %1557 = vrcp.f32 %v2285_v36  ;;  %v759_v5 = vand.u32 2147483647, %v2213_v24  ;;  %v2309_v25 = vadd.f32 1.0, %v1550_v28 }
 0x132   :  { %1396 = vst [vmem:[#allocation11 + $0x8] sm:$0xff] %v1380_v55  ;;  %v587_v29 = vadd.f32 %v586_v19, %v2090_v12  ;;  %v753_v39 = vmul.f32 %v2262_v8, %v752_v4  ;;  %vm756_vm8 = vweird.f32 %v2262_v8  ;;  %v2314_v35 = vadd.f32 1.0, %v1552_v23  ;;  %v536_v15 = vpop.f32.mrf.mxu0 }
 0x133   :  { %v1315_v21 = vsub.f32 1.0, %v1068_v14  ;;  %v1347_v26 = vmul.f32 %v1068_v14, %v1939_v54  ;;  %v761_v59 = vand.u32 2147483648, %v2213_v24  ;;  %1559 = vpow2.f32 %v1438_v49 }
 0x134   :  { %v1455_v43 = vmul.f32 -1.442695, %v952_v38  ;;  %v754_v45 = vadd.f32 %v2262_v8, %v753_v39  ;;  %vm755_vm9 = vweird.f32 %v2213_v24  ;;  %vm760_vm11 = vcmp.eq.f32.partialorder %v759_v5, 8.507059e+37 }
 0x135   :  { %v1554_v50 = vpop.eup %1553  ;;  %vm757_vm10 = vmor %vm755_vm9, %vm756_vm8  ;;  %v762_v3 = vor.u32 1.1754944e-38, %v761_v59  ;;  %v320_v54 = vadd.f32 %v319_v48, %v2098_v16  ;;  %v1074_v62 = vadd.f32 %v2251_v10, %v1073_v34  ;;  %vm1076_vm12 = vweird.f32 %v2251_v10 }
 0x136   :  { %v2320_v51 = vpop.eup %1555  ;;  %v1331_v20 = vmul.f32 %v1554_v50, %v1315_v21  ;;  %v758_v47 = vsel %vm757_vm10, %v2262_v8, %v754_v45  ;;  %v469_v27 = vadd.f32 %v468_v52, %v2051_v56  ;;  %1561 = vrcp.f32 %v2314_v35 }
 0x137   :  { %v2329_v24 = vpop.eup %1557  ;;  %v763_v53 = vsel %vm760_vm11, %v762_v3, %v758_v47  ;;  %v537_v61 = vadd.f32 %v536_v15, %v2036_v42  ;;  %vm1075_vm13 = vweird.f32 %v2205_v40  ;;  %v1087_v60 = vsub.f32 1.0, %v1086_v22 }
 0x138   :  { %v1363_v31 = vadd.f32 %v1347_v26, %v1331_v20  ;;  %v1268_v28 = vmul.f32 %v763_v53, %v587_v29  ;;  %v1079_v8 = vand.u32 2147483647, %v2205_v40  ;;  %v2337_v55 = vadd.f32 %v2034_v41, %v2049_v44  ;;  %vm2341_vm14 = vmor %vm1075_vm13, %vm1076_vm12  ;;  %v471_v45 = vpop.f32.mrf.mxu3 }
 0x139   :  { %1563 = vrcp.f32 %v2309_v25  ;;  %v632_v14 = vadd.f32 %v469_v27, %v202_v46  ;;  %v1560_v49 = vpop.eup %1559  ;;  %v2347_v38 = vadd.f32 %v2053_v57, %v2049_v44  ;;  %v2351_v40 = vmul.f32 %v2329_v24, %v2285_v36  ;;  %v589_v46 = vpop.f32.mrf.mxu1 }
 0x13a   :  { %v1381_v19 = vmul.f32 %v2170_v2, %v1363_v31  ;;  %v1078_v41 = vsel %vm2341_vm14, %v2251_v10, %v1074_v62  ;;  %v1284_v4 = vadd.f32 %v1268_v28, %v320_v54  ;;  %1565 = vpow2.f32 %v1455_v43  ;;  %v539_v15 = vpop.f32.mrf.mxu0 }
 0x13b   :  { %v1082_v34 = vor.u32 1.1754944e-38, %v1081_v17  ;;  %v953_v22 = vadd.f32 %v537_v61, %v1967_v1  ;;  %v766_v5 = vmul.f32 %v2320_v51, %v2274_v0  ;;  %v2361_v57 = vadd.f32 %v2063_v30, %v2049_v44  ;;  %v322_v30 = vpop.f32.mrf.mxu2 }
 0x13c   :  { %1397 = vst [vmem:[#allocation11 + $0x10] sm:$0xff] %v1381_v19  ;;  %v1088_v29 = vmul.f32 %v2292_v63, %v1087_v60  ;;  %vm1090_vm15 = vweird.f32 %v2248_v9  ;;  %vm1080_vm0 = vcmp.eq.f32.partialorder %v1079_v8, 8.507059e+37  ;;  %v2365_v10 = vpop.eup %1561  ;;  %1567 = vtanh.f32 %v1284_v4 }
 0x13d   :  { %v1083_v39 = vsel %vm1080_vm0, %v1082_v34, %v1078_v41  ;;  %v1439_v17 = vmul.f32 -1.442695, %v632_v14  ;;  %v767_v48 = vsub.f32 1.0, %v766_v5  ;;  %v1096_v1 = vand.u32 2147483648, %v2248_v9 }
 0x13e   :  { %v1102_v21 = vsub.f32 1.0, %v2351_v40  ;;  %v590_v26 = vadd.f32 %v589_v46, %v2090_v12  ;;  %v776_v44 = vand.u32 2147483648, %v2274_v0  ;;  %v1456_v52 = vmul.f32 -1.442695, %v953_v22 }
 0x13f   :  { %v2371_v59 = vpop.eup %1563  ;;  %v768_v50 = vmul.f32 %v2320_v51, %v767_v48  ;;  %vm771_vm1 = vweird.f32 %v2320_v51  ;;  %v774_v43 = vand.u32 2147483647, %v2274_v0  ;;  %v2378_v20 = vmul.f32 %v2365_v10, %v2314_v35 }
 0x140   :  { %v2380_v3 = vadd.f32 1.0, %v1560_v49  ;;  %v1316_v54 = vsub.f32 1.0, %v1083_v39  ;;  %vm770_vm2 = vweird.f32 %v2274_v0  ;;  %v1566_v47 = vpop.eup %1565  ;;  %1569 = vpow2.f32 %v1439_v17 }
 0x141   :  { %v769_v62 = vadd.f32 %v2320_v51, %v768_v50  ;;  %v1089_v27 = vadd.f32 %v2292_v63, %v1088_v29  ;;  %vm1091_vm3 = vweird.f32 %v2292_v63  ;;  %vm772_vm4 = vmor %vm770_vm2, %vm771_vm1  ;;  %v777_v31 = vor.u32 1.1754944e-38, %v776_v44  ;;  %v592_v17 = vpop.f32.mrf.mxu1  ;;  %v474_v44 = vpop.f32.mrf.mxu3 }
 0x142   :  { %v323_v53 = vadd.f32 %v322_v30, %v2098_v16  ;;  %v540_v61 = vadd.f32 %v539_v15, %v2036_v42  ;;  %v781_v60 = vmul.f32 %v2371_v59, %v2309_v25  ;;  %v1568_v28 = vpop.eup %1567  ;;  %1571 = vpow2.f32 %v1456_v52  ;;  %vm2399_vm6 = vmor %vm1090_vm15, %vm1091_vm3  ;;  %v542_v15 = vpop.f32.mrf.mxu0 }
 0x143   :  { %v773_v0 = vsel %vm772_vm4, %v2320_v51, %v769_v62  ;;  %vm775_vm5 = vcmp.eq.f32.partialorder %v774_v43, 8.507059e+37  ;;  %v1094_v8 = vand.u32 2147483647, %v2248_v9  ;;  %v2392_v19 = vadd.f32 1.0, %v1566_v47 }
 0x144   :  { %v1332_v23 = vmul.f32 %v1568_v28, %v1316_v54  ;;  %v1348_v14 = vmul.f32 %v1083_v39, %v1945_v32  ;;  %v778_v49 = vsel %vm775_vm5, %v777_v31, %v773_v0  ;;  %1573 = vrcp.f32 %v2380_v3 }
 0x145   :  { %v1269_v51 = vmul.f32 %v778_v49, %v590_v26  ;;  %v1093_v41 = vsel %vm2399_vm6, %v2292_v63, %v1089_v27  ;;  %v1097_v4 = vor.u32 1.1754944e-38, %v1096_v1  ;;  %v472_v32 = vadd.f32 %v471_v45, %v2051_v56  ;;  %v325_v45 = vpop.f32.mrf.mxu2 }
 0x146   :  { %v1364_v34 = vadd.f32 %v1348_v14, %v1332_v23  ;;  %v954_v22 = vadd.f32 %v540_v61, %v1977_v7  ;;  %v782_v46 = vsub.f32 1.0, %v781_v60  ;;  %v1570_v5 = vpop.eup %1569  ;;  %v1103_v9 = vmul.f32 %v2329_v24, %v1102_v21 }
 0x147   :  { %v1111_v29 = vand.u32 2147483648, %v2285_v36  ;;  %vm1095_vm7 = vcmp.eq.f32.partialorder %v1094_v8, 8.507059e+37  ;;  %v1285_v39 = vadd.f32 %v1269_v51, %v323_v53  ;;  %1575 = vrcp.f32 %v2392_v19 }
 0x148   :  { %v1382_v48 = vmul.f32 %v2170_v2, %v1364_v34  ;;  %v1098_v63 = vsel %vm1095_vm7, %v1097_v4, %v1093_v41  ;;  %vm786_vm8 = vweird.f32 %v2371_v59  ;;  %v1572_v1 = vpop.eup %1571  ;;  %vm1105_vm9 = vweird.f32 %v2285_v36  ;;  %v1665_v41 = vld [vmem:[#allocation6 + $0x20] sm:$0xff] }
 0x149   :  { %1577 = vtanh.f32 %v1285_v39  ;;  %v1457_v7 = vmul.f32 -1.442695, %v954_v22  ;;  %v783_v26 = vmul.f32 %v2371_v59, %v782_v46  ;;  %v789_v21 = vand.u32 2147483647, %v2309_v25 }
 0x14a   :  { %v1117_v30 = vsub.f32 1.0, %v2378_v20  ;;  %1398 = vst [vmem:[#allocation11 + $0x18] sm:$0xff] %v1382_v48  ;;  %v633_v52 = vadd.f32 %v472_v32, %v2080_v11  ;;  %v593_v50 = vadd.f32 %v592_v17, %v2090_v12  ;;  %v791_v43 = vand.u32 2147483648, %v2309_v25  ;;  %v2421_v54 = vpop.eup %1573 }
 0x14b   :  { %v1317_v47 = vsub.f32 1.0, %v1098_v63  ;;  %1579 = vpow2.f32 %v1457_v7  ;;  %v784_v62 = vadd.f32 %v2371_v59, %v783_v26  ;;  %vm785_vm10 = vweird.f32 %v2309_v25  ;;  %v595_v7 = vpop.f32.mrf.mxu1 }
 0x14c   :  { %v2425_v27 = vadd.f32 1.0, %v1570_v5  ;;  %v2427_v20 = vadd.f32 1.0, %v1572_v1  ;;  %vm787_vm11 = vmor %vm785_vm10, %vm786_vm8  ;;  %v792_v11 = vor.u32 1.1754944e-38, %v791_v43  ;;  %v475_v31 = vadd.f32 %v474_v44, %v2051_v56 }
 0x14d   :  { %v788_v53 = vsel %vm787_vm11, %v2371_v59, %v784_v62  ;;  %vm790_vm12 = vcmp.eq.f32.partialorder %v789_v21, 8.507059e+37  ;;  %v326_v61 = vadd.f32 %v325_v45, %v2098_v16  ;;  %v543_v60 = vadd.f32 %v542_v15, %v2036_v42  ;;  %v2435_v28 = vpop.eup %1575  ;;  %v328_v21 = vpop.f32.mrf.mxu2 }
 0x14e   :  { %v1440_v25 = vmul.f32 -1.442695, %v633_v52  ;;  %v793_v0 = vsel %vm790_vm12, %v792_v11, %v788_v53  ;;  %v634_v8 = vadd.f32 %v475_v31, %v2087_v6  ;;  %v796_v23 = vmul.f32 %v2421_v54, %v2380_v3 }
 0x14f   :  { %v1578_v14 = vpop.eup %1577  ;;  %v1270_v49 = vmul.f32 %v793_v0, %v593_v50  ;;  %v1104_v40 = vadd.f32 %v2329_v24, %v1103_v9  ;;  %vm1106_vm13 = vweird.f32 %v2329_v24  ;;  %v955_v59 = vadd.f32 %v543_v60, %v1987_v13  ;;  %v545_v50 = vpop.f32.mrf.mxu0 }
 0x150   :  { %v1333_v51 = vmul.f32 %v1578_v14, %v1317_v47  ;;  %v1349_v4 = vmul.f32 %v1665_v41, %v1098_v63  ;;  %v1109_v34 = vand.u32 2147483647, %v2285_v36  ;;  %v1441_v32 = vmul.f32 -1.442695, %v634_v8  ;;  %vm2457_vm15 = vmor %vm1105_vm9, %vm1106_vm13 }
 0x151   :  { %v1580_v22 = vpop.eup %1579  ;;  %v1118_v6 = vmul.f32 %v2365_v10, %v1117_v30  ;;  %v2447_v46 = vmul.f32 %v2435_v28, %v2392_v19  ;;  %1581 = vrcp.f32 %v2427_v20  ;;  %v1286_v5 = vadd.f32 %v1270_v49, %v326_v61 }
 0x152   :  { %vm1120_vm14 = vweird.f32 %v2314_v35  ;;  %v1365_v9 = vadd.f32 %v1349_v4, %v1333_v51  ;;  %1583 = vpow2.f32 %v1440_v25  ;;  %v2451_v13 = vadd.f32 1.0, %v1580_v22 }
 0x153   :  { %v797_v17 = vsub.f32 1.0, %v796_v23  ;;  %1585 = vrcp.f32 %v2425_v27  ;;  %v1108_v48 = vsel %vm2457_vm15, %v2329_v24, %v1104_v40  ;;  %v1112_v63 = vor.u32 1.1754944e-38, %v1111_v29  ;;  %v477_v24 = vpop.f32.mrf.mxu3 }
 0x154   :  { %v1458_v1 = vmul.f32 -1.442695, %v955_v59  ;;  %v1383_v26 = vmul.f32 %v2170_v2, %v1365_v9  ;;  %vm1110_vm0 = vcmp.eq.f32.partialorder %v1109_v34, 8.507059e+37  ;;  %1587 = vpow2.f32 %v1441_v32  ;;  %v1666_v32 = vld [vmem:[#allocation6 + $0x28] sm:$0xff] }
 0x155   :  { %vm801_vm1 = vweird.f32 %v2421_v54  ;;  %1589 = vtanh.f32 %v1286_v5  ;;  %v798_v44 = vmul.f32 %v2421_v54, %v797_v17  ;;  %v804_v30 = vand.u32 2147483647, %v2380_v3 }
 0x156   :  { %v806_v52 = vand.u32 2147483648, %v2380_v3  ;;  %v1126_v36 = vand.u32 2147483648, %v2314_v35  ;;  %1399 = vst [vmem:[#allocation11 + $0x20] sm:$0xff] %v1383_v26  ;;  %1591 = vrcp.f32 %v2451_v13  ;;  %v1113_v29 = vsel %vm1110_vm0, %v1112_v63, %v1108_v48 }
 0x157   :  { %v596_v43 = vadd.f32 %v595_v7, %v2090_v12  ;;  %v2475_v45 = vpop.eup %1581  ;;  %1593 = vpow2.f32 %v1458_v1  ;;  %v799_v15 = vadd.f32 %v2421_v54, %v798_v44  ;;  %vm800_vm2 = vweird.f32 %v2380_v3 }
 0x158   :  { %v1119_v47 = vadd.f32 %v2365_v10, %v1118_v6  ;;  %v1584_v62 = vpop.eup %1583  ;;  %vm802_vm3 = vmor %vm800_vm2, %vm801_vm1  ;;  %v807_v11 = vor.u32 1.1754944e-38, %v806_v52  ;;  %vm1121_vm4 = vweird.f32 %v2365_v10  ;;  %v478_v31 = vadd.f32 %v477_v24, %v2051_v56 }
 0x159   :  { %v546_v53 = vadd.f32 %v545_v50, %v2036_v42  ;;  %v2485_v61 = vpop.eup %1585  ;;  %v1132_v60 = vsub.f32 1.0, %v2447_v46  ;;  %v803_v25 = vsel %vm802_vm3, %v2421_v54, %v799_v15  ;;  %vm805_vm5 = vcmp.eq.f32.partialorder %v804_v30, 8.507059e+37  ;;  %vm2503_vm6 = vmor %vm1120_vm14, %vm1121_vm4  ;;  %v548_v50 = vpop.f32.mrf.mxu0 }
 0x15a   :  { %v329_v3 = vadd.f32 %v328_v21, %v2098_v16  ;;  %v1588_v0 = vpop.eup %1587  ;;  %v1318_v8 = vsub.f32 1.0, %v1113_v29  ;;  %v808_v23 = vsel %vm805_vm5, %v807_v11, %v803_v25  ;;  %v1124_v14 = vand.u32 2147483647, %v2314_v35  ;;  %v598_v35 = vpop.f32.mrf.mxu1  ;;  %v1667_v11 = vld [vmem:[#allocation6 + $0x30] sm:$0xff] }
 0x15b   :  { %v956_v49 = vadd.f32 %v546_v53, %v1997_v18  ;;  %v1590_v40 = vpop.eup %1589  ;;  %v1141_v59 = vand.u32 2147483648, %v2392_v19  ;;  %v2495_v51 = vmul.f32 %v2475_v45, %v2427_v20  ;;  %v2497_v41 = vadd.f32 1.0, %v1584_v62  ;;  %v331_v21 = vpop.f32.mrf.mxu2 }
 0x15c   :  { %v1271_v54 = vmul.f32 %v808_v23, %v596_v43  ;;  %v2507_v34 = vpop.eup %1591  ;;  %v1334_v18 = vmul.f32 %v1590_v40, %v1318_v8  ;;  %v1350_v22 = vmul.f32 %v1666_v32, %v1113_v29  ;;  %v1123_v6 = vsel %vm2503_vm6, %v2365_v10, %v1119_v47  ;;  %v480_v24 = vpop.f32.mrf.mxu3 }
 0x15d   :  { %v635_v46 = vadd.f32 %v478_v31, %v2102_v33  ;;  %v1594_v5 = vpop.eup %1593  ;;  %v1127_v9 = vor.u32 1.1754944e-38, %v1126_v36  ;;  %v1459_v17 = vmul.f32 -1.442695, %v956_v49  ;;  %v811_v48 = vmul.f32 %v2485_v61, %v2425_v27 }
 0x15e   :  { %v1287_v39 = vadd.f32 %v1271_v54, %v329_v3  ;;  %v1133_v63 = vmul.f32 %v2435_v28, %v1132_v60  ;;  %v1366_v1 = vadd.f32 %v1350_v22, %v1334_v18  ;;  %v2516_v7 = vadd.f32 1.0, %v1588_v0 }
 0x15f   :  { %vm1125_vm7 = vcmp.eq.f32.partialorder %v1124_v14, 8.507059e+37  ;;  %v1147_v26 = vsub.f32 1.0, %v2495_v51  ;;  %1595 = vrcp.f32 %v2497_v41  ;;  %v1161_v33 = vmul.f32 %v2507_v34, %v2451_v13  ;;  %v2953_v14 = vld [vmem:[#allocation16_spill] sm:$0xff] }
 0x160   :  { %v1128_v10 = vsel %vm1125_vm7, %v1127_v9, %v1123_v6  ;;  %vm1135_vm8 = vweird.f32 %v2392_v19  ;;  %v1384_v44 = vmul.f32 %v2170_v2, %v1366_v1  ;;  %1597 = vtanh.f32 %v1287_v39 }
 0x161   :  { %v1442_v30 = vmul.f32 -1.442695, %v635_v46  ;;  %v812_v52 = vsub.f32 1.0, %v811_v48  ;;  %v2524_v36 = vadd.f32 1.0, %v1594_v5  ;;  %1599 = vpow2.f32 %v1459_v17 }
 0x162   :  { %v599_v29 = vadd.f32 %v598_v35, %v2090_v12  ;;  %v821_v43 = vand.u32 2147483648, %v2425_v27  ;;  %1400 = vst [vmem:[#allocation11 + $0x28] sm:$0xff] %v1384_v44  ;;  %1601 = vrcp.f32 %v2516_v7  ;;  %vm816_vm9 = vweird.f32 %v2485_v61  ;;  %v601_v6 = vpop.f32.mrf.mxu1 }
 0x163   :  { %v813_v15 = vmul.f32 %v2485_v61, %v812_v52  ;;  %v819_v47 = vand.u32 2147483647, %v2425_v27  ;;  %v1319_v62 = vsub.f32 1.0, %v1128_v10  ;;  %v1351_v31 = vmul.f32 %v1667_v11, %v1128_v10  ;;  %v334_v44 = vpop.f32.mrf.mxu2 }
 0x164   :  { %v481_v53 = vadd.f32 %v480_v24, %v2051_v56  ;;  %v549_v60 = vadd.f32 %v548_v50, %v2036_v42  ;;  %v1162_v25 = vsub.f32 1.0, %v1161_v33  ;;  %1603 = vpow2.f32 %v1442_v30 }
 0x165   :  { %v814_v3 = vadd.f32 %v2485_v61, %v813_v15  ;;  %vm815_vm10 = vweird.f32 %v2425_v27  ;;  %v2536_v0 = vpop.eup %1595  ;;  %1605 = vrcp.f32 %v2524_v36  ;;  %v822_v8 = vor.u32 1.1754944e-38, %v821_v43  ;;  %v483_v43 = vpop.f32.mrf.mxu3 }
 0x166   :  { %vm817_vm11 = vmor %vm815_vm10, %vm816_vm9  ;;  %v636_v23 = vadd.f32 %v481_v53, %v2117_v58  ;;  %v957_v49 = vadd.f32 %v549_v60, %v2953_v14  ;;  %v1598_v40 = vpop.eup %1597  ;;  %vm820_vm12 = vcmp.eq.f32.partialorder %v819_v47, 8.507059e+37  ;;  %v1134_v54 = vadd.f32 %v2435_v28, %v1133_v63 }
 0x167   :  { %v818_v51 = vsel %vm817_vm11, %v2485_v61, %v814_v3  ;;  %vm1136_vm13 = vweird.f32 %v2435_v28  ;;  %v1600_v4 = vpop.eup %1599  ;;  %v1335_v27 = vmul.f32 %v1598_v40, %v1319_v62  ;;  %v332_v32 = vadd.f32 %v331_v21, %v2098_v16  ;;  %v551_v62 = vpop.f32.mrf.mxu0 }
 0x168   :  { %v823_v18 = vsel %vm820_vm12, %v822_v8, %v818_v51  ;;  %v1443_v22 = vmul.f32 -1.442695, %v636_v23  ;;  %v2545_v46 = vpop.eup %1601  ;;  %v2547_v58 = vadd.f32 1.0, %v1600_v4  ;;  %v1139_v9 = vand.u32 2147483647, %v2392_v19  ;;  %vm2553_vm14 = vmor %vm1135_vm8, %vm1136_vm13 }
 0x169   :  { %v1272_v5 = vmul.f32 %v823_v18, %v599_v29  ;;  %v1460_v61 = vmul.f32 -1.442695, %v957_v49  ;;  %v1156_v39 = vand.u32 2147483648, %v2427_v20  ;;  %v1367_v17 = vadd.f32 %v1351_v31, %v1335_v27 }
 0x16a   :  { %1607 = vpow2.f32 %v1443_v22  ;;  %v826_v48 = vmul.f32 %v2536_v0, %v2497_v41  ;;  %v1604_v63 = vpop.eup %1603  ;;  %v1148_v1 = vmul.f32 %v2475_v45, %v1147_v26  ;;  %vm1150_vm15 = vweird.f32 %v2427_v20  ;;  %v604_v51 = vpop.f32.mrf.mxu1 }
 0x16b   :  { %v2562_v33 = vmul.f32 %v2507_v34, %v1162_v25  ;;  %v1138_v10 = vsel %vm2553_vm14, %v2435_v28, %v1134_v54  ;;  %v1142_v21 = vor.u32 1.1754944e-38, %v1141_v59  ;;  %v2569_v30 = vpop.eup %1605  ;;  %v1385_v52 = vmul.f32 %v2170_v2, %v1367_v17 }
 0x16c   :  { %v1288_v24 = vadd.f32 %v1272_v5, %v332_v32  ;;  %1609 = vpow2.f32 %v1460_v61  ;;  %v827_v26 = vsub.f32 1.0, %v826_v48  ;;  %vm1140_vm0 = vcmp.eq.f32.partialorder %v1139_v9, 8.507059e+37  ;;  %v337_v48 = vpop.f32.mrf.mxu2 }
 0x16d   :  { %1611 = vrcp.f32 %v2547_v58  ;;  %v834_v50 = vand.u32 2147483647, %v2497_v41  ;;  %v836_v29 = vand.u32 2147483648, %v2497_v41  ;;  %1401 = vst [vmem:[#allocation11 + $0x30] sm:$0xff] %v1385_v52  ;;  %v602_v19 = vadd.f32 %v601_v6, %v2090_v12 }
 0x16e   :  { %1613 = vtanh.f32 %v1288_v24  ;;  %v828_v28 = vmul.f32 %v2536_v0, %v827_v26  ;;  %vm831_vm1 = vweird.f32 %v2536_v0  ;;  %v2580_v59 = vmul.f32 %v2569_v30, %v2524_v36  ;;  %v486_v24 = vpop.f32.mrf.mxu3 }
 0x16f   :  { %v2582_v15 = vadd.f32 1.0, %v1604_v63  ;;  %v1143_v47 = vsel %vm1140_vm0, %v1142_v21, %v1138_v10  ;;  %vm830_vm2 = vweird.f32 %v2497_v41  ;;  %v335_v53 = vadd.f32 %v334_v44, %v2098_v16 }
 0x170   :  { %v1608_v11 = vpop.eup %1607  ;;  %v829_v31 = vadd.f32 %v2536_v0, %v828_v28  ;;  %v1149_v60 = vadd.f32 %v2475_v45, %v1148_v1  ;;  %v484_v25 = vadd.f32 %v483_v43, %v2051_v56  ;;  %vm832_vm3 = vmor %vm830_vm2, %vm831_vm1  ;;  %vm835_vm4 = vcmp.eq.f32.partialorder %v834_v50, 8.507059e+37  ;;  %v2958_v1 = vld [vmem:[#allocation17_spill] sm:$0xff]  ;;  %v554_v43 = vpop.f32.mrf.mxu0 }
 0x171   :  { %v2589_v3 = vadd.f32 1.0, %v1608_v11  ;;  %v837_v8 = vor.u32 1.1754944e-38, %v836_v29  ;;  %vm1151_vm5 = vweird.f32 %v2475_v45  ;;  %v1154_v14 = vand.u32 2147483647, %v2427_v20 }
 0x172   :  { %v1610_v23 = vpop.eup %1609  ;;  %v833_v41 = vsel %vm832_vm3, %v2536_v0, %v829_v31  ;;  %v637_v49 = vadd.f32 %v484_v25, %v2298_v37  ;;  %v552_v40 = vadd.f32 %v551_v62, %v2036_v42  ;;  %v1320_v4 = vsub.f32 1.0, %v1143_v47  ;;  %v1668_v0 = vld [vmem:[#allocation6 + $0x38] sm:$0xff]  ;;  %vm2607_vm6 = vmor %vm1150_vm15, %vm1151_vm5 }
 0x173   :  { %v2596_v54 = vpop.eup %1611  ;;  %v2598_v27 = vadd.f32 1.0, %v1610_v23  ;;  %v838_v18 = vsel %vm835_vm4, %v837_v8, %v833_v41  ;;  %v841_v32 = vmul.f32 %v2545_v46, %v2516_v7  ;;  %1615 = vrcp.f32 %v2582_v15  ;;  %v607_v41 = vpop.f32.mrf.mxu1 }
 0x174   :  { %v1614_v22 = vpop.eup %1613  ;;  %v1352_v6 = vmul.f32 %v1668_v0, %v1143_v47  ;;  %v1273_v5 = vmul.f32 %v838_v18, %v602_v19  ;;  %v1444_v9 = vmul.f32 -1.442695, %v637_v49  ;;  %1617 = vrcp.f32 %v2589_v3 }
 0x175   :  { %v1336_v61 = vmul.f32 %v1614_v22, %v1320_v4  ;;  %v1153_v17 = vsel %vm2607_vm6, %v2475_v45, %v1149_v60  ;;  %v1157_v35 = vor.u32 1.1754944e-38, %v1156_v39  ;;  %vm1165_vm7 = vweird.f32 %v2451_v13 }
 0x176   :  { %vm1155_vm8 = vcmp.eq.f32.partialorder %v1154_v14, 8.507059e+37  ;;  %v1289_v63 = vadd.f32 %v1273_v5, %v335_v53  ;;  %1619 = vpow2.f32 %v1444_v9  ;;  %v958_v10 = vadd.f32 %v552_v40, %v2958_v1 }
 0x177   :  { %v2621_v21 = vmul.f32 %v2596_v54, %v2547_v58  ;;  %v1368_v44 = vadd.f32 %v1352_v6, %v1336_v61  ;;  %1621 = vrcp.f32 %v2598_v27  ;;  %v842_v52 = vsub.f32 1.0, %v841_v32  ;;  %v2959_v32 = vld [vmem:[#allocation18_spill] sm:$0xff]  ;;  %v1669_v6 = vld [vmem:[#allocation6 + $0x40] sm:$0xff]  ;;  %v340_v61 = vpop.f32.mrf.mxu2 }
 0x178   :  { %v1158_v45 = vsel %vm1155_vm8, %v1157_v35, %v1153_v17  ;;  %1623 = vtanh.f32 %v1289_v63  ;;  %v1461_v20 = vmul.f32 -1.442695, %v958_v10  ;;  %v851_v39 = vand.u32 2147483648, %v2516_v7 }
 0x179   :  { %v1386_v26 = vmul.f32 %v2170_v2, %v1368_v44  ;;  %v843_v50 = vmul.f32 %v2545_v46, %v842_v52  ;;  %vm846_vm9 = vweird.f32 %v2545_v46  ;;  %v849_v29 = vand.u32 2147483647, %v2516_v7  ;;  %v2629_v19 = vpop.eup %1615 }
 0x17a   :  { %v1171_v28 = vand.u32 2147483648, %v2451_v13  ;;  %v1177_v47 = vsub.f32 1.0, %v2580_v59  ;;  %1625 = vpow2.f32 %v1461_v20  ;;  %v605_v62 = vadd.f32 %v604_v51, %v2090_v12  ;;  %v2634_v11 = vpop.eup %1617 }
 0x17b   :  { %1402 = vst [vmem:[#allocation11 + $0x38] sm:$0xff] %v1386_v26  ;;  %v1321_v31 = vsub.f32 1.0, %v1158_v45  ;;  %v844_v53 = vadd.f32 %v2545_v46, %v843_v50  ;;  %vm845_vm10 = vweird.f32 %v2516_v7  ;;  %v487_v60 = vadd.f32 %v486_v24, %v2051_v56  ;;  %v489_v50 = vpop.f32.mrf.mxu3 }
 0x17c   :  { %v1620_v25 = vpop.eup %1619  ;;  %vm847_vm11 = vmor %vm845_vm10, %vm846_vm9  ;;  %v852_v8 = vor.u32 1.1754944e-38, %v851_v39  ;;  %v1164_v59 = vadd.f32 %v2507_v34, %v2562_v33  ;;  %vm1166_vm12 = vweird.f32 %v2507_v34  ;;  %v555_v23 = vadd.f32 %v554_v43, %v2036_v42 }
 0x17d   :  { %v2645_v14 = vpop.eup %1621  ;;  %v1192_v49 = vsub.f32 1.0, %v2621_v21  ;;  %v848_v7 = vsel %vm847_vm11, %v2545_v46, %v844_v53  ;;  %vm850_vm13 = vcmp.eq.f32.partialorder %v849_v29, 8.507059e+37  ;;  %v338_v40 = vadd.f32 %v337_v48, %v2098_v16  ;;  %vm2658_vm14 = vmor %vm1165_vm7, %vm1166_vm12  ;;  %v557_v29 = vpop.f32.mrf.mxu0 }
 0x17e   :  { %v1624_v51 = vpop.eup %1623  ;;  %v2650_v4 = vadd.f32 1.0, %v1620_v25  ;;  %v853_v18 = vsel %vm850_vm13, %v852_v8, %v848_v7  ;;  %v1169_v33 = vand.u32 2147483647, %v2451_v13  ;;  %v959_v22 = vadd.f32 %v555_v23, %v2959_v32 }
 0x17f   :  { %v1337_v0 = vmul.f32 %v1624_v51, %v1321_v31  ;;  %v1353_v5 = vmul.f32 %v1669_v6, %v1158_v45  ;;  %v1274_v37 = vmul.f32 %v853_v18, %v605_v62  ;;  %v638_v9 = vadd.f32 %v487_v60, %v2337_v55  ;;  %v610_v60 = vpop.f32.mrf.mxu1  ;;  %v343_v32 = vpop.f32.mrf.mxu2 }
 0x180   :  { %v1626_v17 = vpop.eup %1625  ;;  %v2665_v35 = vmul.f32 %v2645_v14, %v2598_v27  ;;  %v1168_v48 = vsel %vm2658_vm14, %v2507_v34, %v1164_v59  ;;  %v1172_v63 = vor.u32 1.1754944e-38, %v1171_v28  ;;  %v1462_v1 = vmul.f32 -1.442695, %v959_v22 }
 0x181   :  { %v1369_v10 = vadd.f32 %v1353_v5, %v1337_v0  ;;  %v2670_v13 = vadd.f32 1.0, %v1626_v17  ;;  %v1290_v21 = vadd.f32 %v1274_v37, %v338_v40  ;;  %v856_v44 = vmul.f32 %v2629_v19, %v2582_v15  ;;  %v1670_v0 = vld [vmem:[#allocation6 + $0x48] sm:$0xff] }
 0x182   :  { %v1178_v55 = vmul.f32 %v2569_v30, %v1177_v47  ;;  %vm1180_vm15 = vweird.f32 %v2524_v36  ;;  %v1186_v52 = vand.u32 2147483648, %v2524_v36  ;;  %1627 = vrcp.f32 %v2650_v4 }
 0x183   :  { %vm1170_vm0 = vcmp.eq.f32.partialorder %v1169_v33, 8.507059e+37  ;;  %v1387_v34 = vmul.f32 %v2170_v2, %v1369_v10  ;;  %1629 = vrcp.f32 %v2670_v13  ;;  %v1445_v20 = vmul.f32 -1.442695, %v638_v9 }
 0x184   :  { %v1173_v45 = vsel %vm1170_vm0, %v1172_v63, %v1168_v48  ;;  %v1201_v39 = vand.u32 2147483648, %v2547_v58  ;;  %1631 = vtanh.f32 %v1290_v21  ;;  %v857_v24 = vsub.f32 1.0, %v856_v44 }
 0x185   :  { %v866_v26 = vand.u32 2147483648, %v2582_v15  ;;  %v2683_v43 = vmul.f32 %v2596_v54, %v1192_v49  ;;  %v1207_v28 = vsub.f32 1.0, %v2665_v35  ;;  %1403 = vst [vmem:[#allocation11 + $0x40] sm:$0xff] %v1387_v34  ;;  %1633 = vpow2.f32 %v1462_v1 }
 0x186   :  { %v608_v47 = vadd.f32 %v607_v41, %v2090_v12  ;;  %v1322_v62 = vsub.f32 1.0, %v1173_v45  ;;  %v858_v31 = vmul.f32 %v2629_v19, %v857_v24  ;;  %vm861_vm1 = vweird.f32 %v2629_v19  ;;  %v492_v24 = vpop.f32.mrf.mxu3 }
 0x187   :  { %v864_v53 = vand.u32 2147483647, %v2582_v15  ;;  %1635 = vpow2.f32 %v1445_v20  ;;  %vm860_vm2 = vweird.f32 %v2582_v15  ;;  %v490_v25 = vadd.f32 %v489_v50, %v2051_v56 }
 0x188   :  { %v558_v8 = vadd.f32 %v557_v29, %v2036_v42  ;;  %v2693_v59 = vpop.eup %1627  ;;  %v859_v23 = vadd.f32 %v2629_v19, %v858_v31  ;;  %v867_v41 = vor.u32 1.1754944e-38, %v866_v26  ;;  %v1179_v49 = vadd.f32 %v2569_v30, %v1178_v55  ;;  %vm2700_vm4 = vmor %vm860_vm2, %vm861_vm1  ;;  %v2964_v42 = vld [vmem:[#allocation19_spill] sm:$0xff] }
 0x189   :  { %vm1181_vm3 = vweird.f32 %v2569_v30  ;;  %v2698_v7 = vpop.eup %1629  ;;  %v1184_v15 = vand.u32 2147483647, %v2524_v36  ;;  %v639_v51 = vadd.f32 %v490_v25, %v2347_v38  ;;  %v871_v33 = vmul.f32 %v2634_v11, %v2589_v3 }
 0x18a   :  { %v960_v18 = vadd.f32 %v558_v8, %v2964_v42  ;;  %v1632_v22 = vpop.eup %1631  ;;  %v1354_v6 = vmul.f32 %v1670_v0, %v1173_v45  ;;  %v863_v5 = vsel %vm2700_vm4, %v2629_v19, %v859_v23  ;;  %vm865_vm5 = vcmp.eq.f32.partialorder %v864_v53, 8.507059e+37  ;;  %vm2718_vm7 = vmor %vm1180_vm15, %vm1181_vm3 }
 0x18b   :  { %v341_v37 = vadd.f32 %v340_v61, %v2098_v16  ;;  %v1634_v46 = vpop.eup %1633  ;;  %vm1195_vm6 = vweird.f32 %v2547_v58  ;;  %v1338_v38 = vmul.f32 %v1632_v22, %v1322_v62  ;;  %v868_v9 = vsel %vm865_vm5, %v867_v41, %v863_v5 }
 0x18c   :  { %v1187_v48 = vor.u32 1.1754944e-38, %v1186_v52  ;;  %v1446_v63 = vmul.f32 -1.442695, %v639_v51  ;;  %v2722_v1 = vadd.f32 1.0, %v1634_v46  ;;  %v1275_v19 = vmul.f32 %v868_v9, %v608_v47  ;;  %v613_v47 = vpop.f32.mrf.mxu1 }
 0x18d   :  { %v1183_v61 = vsel %vm2718_vm7, %v2569_v30, %v1179_v49  ;;  %v1463_v10 = vmul.f32 -1.442695, %v960_v18  ;;  %v1636_v21 = vpop.eup %1635  ;;  %v1370_v44 = vadd.f32 %v1354_v6, %v1338_v38  ;;  %vm2727_vm8 = vcmp.eq.f32.partialorder %v1184_v15, 8.507059e+37  ;;  %v346_v49 = vpop.f32.mrf.mxu2 }
 0x18e   :  { %v611_v36 = vadd.f32 %v610_v60, %v2090_v12  ;;  %v872_v34 = vsub.f32 1.0, %v871_v33  ;;  %v1221_v52 = vmul.f32 %v2698_v7, %v2670_v13  ;;  %1637 = vpow2.f32 %v1446_v63 }
 0x18f   :  { %vm875_vm9 = vweird.f32 %v2589_v3  ;;  %vm876_vm10 = vweird.f32 %v2634_v11  ;;  %v1388_v30 = vmul.f32 %v2170_v2, %v1370_v44  ;;  %1639 = vrcp.f32 %v2722_v1 }
 0x190   :  { %v1291_v45 = vadd.f32 %v1275_v19, %v341_v37  ;;  %v873_v20 = vmul.f32 %v2634_v11, %v872_v34  ;;  %v2739_v26 = vadd.f32 1.0, %v1636_v21  ;;  %1641 = vpow2.f32 %v1463_v10  ;;  %vm877_vm12 = vmor %vm875_vm9, %vm876_vm10  ;;  %v1671_v37 = vld [vmem:[#allocation6 + $0x50] sm:$0xff] }
 0x191   :  { %v879_v50 = vand.u32 2147483647, %v2589_v3  ;;  %v881_v29 = vand.u32 2147483648, %v2589_v3  ;;  %1404 = vst [vmem:[#allocation11 + $0x48] sm:$0xff] %v1388_v30  ;;  %v1194_v31 = vadd.f32 %v2596_v54, %v2683_v43  ;;  %vm1196_vm11 = vweird.f32 %v2596_v54 }
 0x192   :  { %1643 = vtanh.f32 %v1291_v45  ;;  %v874_v62 = vadd.f32 %v2634_v11, %v873_v20  ;;  %v1222_v53 = vsub.f32 1.0, %v1221_v52  ;;  %v1188_v60 = vsel %vm2727_vm8, %v1187_v48, %v1183_v61  ;;  %vm2763_vm14 = vmor %vm1195_vm6, %vm1196_vm11 }
 0x193   :  { %v882_v25 = vor.u32 1.1754944e-38, %v881_v29  ;;  %v493_v8 = vadd.f32 %v492_v24, %v2051_v56  ;;  %vm880_vm13 = vcmp.eq.f32.partialorder %v879_v50, 8.507059e+37  ;;  %v344_v41 = vadd.f32 %v343_v32, %v2098_v16 }
 0x194   :  { %v878_v23 = vsel %vm877_vm12, %v2634_v11, %v874_v62  ;;  %v1199_v43 = vand.u32 2147483647, %v2547_v58  ;;  %v1638_v40 = vpop.eup %1637  ;;  %v1216_v15 = vand.u32 2147483648, %v2598_v27  ;;  %1645 = vrcp.f32 %v2739_v26  ;;  %v616_v44 = vpop.f32.mrf.mxu1 }
 0x195   :  { %v883_v51 = vsel %vm880_vm13, %v882_v25, %v878_v23  ;;  %v640_v3 = vadd.f32 %v493_v8, %v2361_v57  ;;  %v2768_v11 = vpop.eup %1639  ;;  %v1208_v42 = vmul.f32 %v2645_v14, %v1207_v28  ;;  %v1231_v18 = vand.u32 2147483648, %v2670_v13  ;;  %v349_v29 = vpop.f32.mrf.mxu2 }
 0x196   :  { %v1276_v33 = vmul.f32 %v883_v51, %v611_v36  ;;  %v1198_v32 = vsel %vm2763_vm14, %v2596_v54, %v1194_v31  ;;  %v1642_v22 = vpop.eup %1641  ;;  %vm1210_vm15 = vweird.f32 %v2598_v27  ;;  %v1323_v0 = vsub.f32 1.0, %v1188_v60  ;;  %v1672_v36 = vld [vmem:[#allocation6 + $0x58] sm:$0xff] }
 0x197   :  { %v1202_v57 = vor.u32 1.1754944e-38, %v1201_v39  ;;  %v1447_v6 = vmul.f32 -1.442695, %v640_v3  ;;  %v886_v35 = vmul.f32 %v2693_v59, %v2650_v4  ;;  %v2783_v28 = vmul.f32 %v2698_v7, %v1222_v53 }
 0x198   :  { %v1644_v5 = vpop.eup %1643  ;;  %v1355_v46 = vmul.f32 %v1671_v37, %v1188_v60  ;;  %vm1200_vm0 = vcmp.eq.f32.partialorder %v1199_v43, 8.507059e+37  ;;  %v1292_v38 = vadd.f32 %v1276_v33, %v344_v41  ;;  %v2785_v9 = vadd.f32 1.0, %v1638_v40 }
 0x199   :  { %v1339_v54 = vmul.f32 %v1644_v5, %v1323_v0  ;;  %v1203_v17 = vsel %vm1200_vm0, %v1202_v57, %v1198_v32  ;;  %v614_v48 = vadd.f32 %v613_v47, %v2090_v12  ;;  %v2790_v58 = vmul.f32 %v2768_v11, %v2722_v1 }
 0x19a   :  { %v2792_v39 = vadd.f32 1.0, %v1642_v22  ;;  %1647 = vtanh.f32 %v1292_v38  ;;  %v887_v63 = vsub.f32 1.0, %v886_v35  ;;  %v2794_v19 = vpop.eup %1645  ;;  %v894_v10 = vand.u32 2147483647, %v2650_v4 }
 0x19b   :  { %v1371_v61 = vadd.f32 %v1355_v46, %v1339_v54  ;;  %1649 = vpow2.f32 %v1447_v6  ;;  %v896_v21 = vand.u32 2147483648, %v2650_v4  ;;  %v1324_v55 = vsub.f32 1.0, %v1203_v17 }
 0x19c   :  { %v1356_v34 = vmul.f32 %v1672_v36, %v1203_v17  ;;  %v888_v52 = vmul.f32 %v2693_v59, %v887_v63  ;;  %vm891_vm1 = vweird.f32 %v2693_v59  ;;  %1651 = vrcp.f32 %v2785_v9  ;;  %v619_v6 = vpop.f32.mrf.mxu1 }
 0x19d   :  { %v1389_v30 = vmul.f32 %v2170_v2, %v1371_v61  ;;  %v1209_v45 = vadd.f32 %v2645_v14, %v1208_v42  ;;  %vm1211_vm2 = vweird.f32 %v2645_v14  ;;  %vm1225_vm3 = vweird.f32 %v2670_v13 }
 0x19e   :  { %v1237_v20 = vsub.f32 1.0, %v2790_v58  ;;  %v889_v24 = vadd.f32 %v2693_v59, %v888_v52  ;;  %vm890_vm4 = vweird.f32 %v2650_v4  ;;  %v901_v50 = vmul.f32 %v2794_v19, %v2739_v26  ;;  %vm2817_vm7 = vmor %vm1210_vm15, %vm1211_vm2  ;;  %v352_v58 = vpop.f32.mrf.mxu2 }
 0x19f   :  { %1405 = vst [vmem:[#allocation11 + $0x50] sm:$0xff] %v1389_v30  ;;  %1653 = vrcp.f32 %v2792_v39  ;;  %vm892_vm5 = vmor %vm890_vm4, %vm891_vm1  ;;  %vm895_vm6 = vcmp.eq.f32.partialorder %v894_v10, 8.507059e+37  ;;  %v897_v47 = vor.u32 1.1754944e-38, %v896_v21  ;;  %v347_v62 = vadd.f32 %v346_v49, %v2098_v16 }
 0x1a0   :  { %v1648_v31 = vpop.eup %1647  ;;  %v893_v53 = vsel %vm892_vm5, %v2693_v59, %v889_v24  ;;  %v1214_v60 = vand.u32 2147483647, %v2598_v27  ;;  %v902_v25 = vsub.f32 1.0, %v901_v50  ;;  %v909_v8 = vand.u32 2147483647, %v2739_v26 }
 0x1a1   :  { %v1650_v23 = vpop.eup %1649  ;;  %v1340_v41 = vmul.f32 %v1648_v31, %v1324_v55  ;;  %v898_v43 = vsel %vm895_vm6, %v897_v47, %v893_v53  ;;  %v1213_v59 = vsel %vm2817_vm7, %v2645_v14, %v1209_v45  ;;  %v1217_v49 = vor.u32 1.1754944e-38, %v1216_v15 }
 0x1a2   :  { %v2828_v40 = vadd.f32 1.0, %v1650_v23  ;;  %v1277_v51 = vmul.f32 %v898_v43, %v614_v48  ;;  %v903_v56 = vmul.f32 %v2794_v19, %v902_v25  ;;  %vm906_vm8 = vweird.f32 %v2794_v19  ;;  %v2832_v3 = vpop.eup %1651 }
 0x1a3   :  { %v1372_v42 = vadd.f32 %v1356_v34, %v1340_v41  ;;  %v617_v33 = vadd.f32 %v616_v44, %v2090_v12  ;;  %vm905_vm9 = vweird.f32 %v2739_v26  ;;  %v911_v32 = vand.u32 2147483648, %v2739_v26 }
 0x1a4   :  { %1655 = vrcp.f32 %v2828_v40  ;;  %v1293_v27 = vadd.f32 %v1277_v51, %v347_v62  ;;  %v904_v14 = vadd.f32 %v2794_v19, %v903_v56  ;;  %vm910_vm10 = vcmp.eq.f32.partialorder %v909_v8, 8.507059e+37  ;;  %vm907_vm11 = vmor %vm905_vm9, %vm906_vm8  ;;  %v622_v25 = vpop.f32.mrf.mxu1 }
 0x1a5   :  { %v2839_v15 = vpop.eup %1653  ;;  %v1390_v22 = vmul.f32 %v2170_v2, %v1372_v42  ;;  %v912_v0 = vor.u32 1.1754944e-38, %v911_v32  ;;  %v1224_v57 = vadd.f32 %v2698_v7, %v2783_v28  ;;  %vm1226_vm12 = vweird.f32 %v2698_v7 }
 0x1a6   :  { %1657 = vtanh.f32 %v1293_v27  ;;  %v908_v26 = vsel %vm907_vm11, %v2794_v19, %v904_v14  ;;  %v350_v35 = vadd.f32 %v349_v29, %v2098_v16  ;;  %v1229_v5 = vand.u32 2147483647, %v2670_v13  ;;  %vm2850_vm14 = vmor %vm1225_vm3, %vm1226_vm12  ;;  %v355_v27 = vpop.f32.mrf.mxu2 }
 0x1a7   :  { %1406 = vst [vmem:[#allocation11 + $0x58] sm:$0xff] %v1390_v22  ;;  %vm1215_vm13 = vcmp.eq.f32.partialorder %v1214_v60, 8.507059e+37  ;;  %v913_v37 = vsel %vm910_vm10, %v912_v0, %v908_v26  ;;  %v916_v28 = vmul.f32 %v2832_v3, %v2785_v9  ;;  %v1251_v38 = vmul.f32 %v2839_v15, %v2792_v39 }
 0x1a8   :  { %v1218_v54 = vsel %vm1215_vm13, %v1217_v49, %v1213_v59  ;;  %v1278_v17 = vmul.f32 %v913_v37, %v617_v33  ;;  %v1228_v48 = vsel %vm2850_vm14, %v2698_v7, %v1224_v57  ;;  %v1238_v63 = vmul.f32 %v2768_v11, %v1237_v20 }
 0x1a9   :  { %v1246_v19 = vand.u32 2147483648, %v2722_v1  ;;  %v1232_v61 = vor.u32 1.1754944e-38, %v1231_v18  ;;  %v917_v10 = vsub.f32 1.0, %v916_v28  ;;  %vm1240_vm15 = vweird.f32 %v2722_v1  ;;  %v1673_v18 = vld [vmem:[#allocation6 + $0x60] sm:$0xff] }
 0x1aa   :  { %v2865_v21 = vpop.eup %1655  ;;  %vm1230_vm0 = vcmp.eq.f32.partialorder %v1229_v5, 8.507059e+37  ;;  %v1294_v44 = vadd.f32 %v1278_v17, %v350_v35  ;;  %v924_v55 = vand.u32 2147483647, %v2785_v9  ;;  %v926_v36 = vand.u32 2147483648, %v2785_v9 }
 0x1ab   :  { %v1325_v7 = vsub.f32 1.0, %v1218_v54  ;;  %v1233_v34 = vsel %vm1230_vm0, %v1232_v61, %v1228_v48  ;;  %v918_v52 = vmul.f32 %v2832_v3, %v917_v10  ;;  %vm921_vm1 = vweird.f32 %v2832_v3  ;;  %v1675_v61 = vld [vmem:[#allocation6 + $0x70] sm:$0xff] }
 0x1ac   :  { %v1658_v30 = vpop.eup %1657  ;;  %v1252_v13 = vsub.f32 1.0, %v1251_v38  ;;  %v1357_v45 = vmul.f32 %v1673_v18, %v1218_v54  ;;  %1659 = vtanh.f32 %v1294_v44  ;;  %v620_v20 = vadd.f32 %v619_v6, %v2090_v12 }
 0x1ad   :  { %v1341_v24 = vmul.f32 %v1658_v30, %v1325_v7  ;;  %v919_v50 = vadd.f32 %v2832_v3, %v918_v52  ;;  %vm920_vm2 = vweird.f32 %v2785_v9  ;;  %v931_v29 = vmul.f32 %v2865_v21, %v2828_v40 }
 0x1ae   :  { %v1326_v47 = vsub.f32 1.0, %v1233_v34  ;;  %vm922_vm3 = vmor %vm920_vm2, %vm921_vm1  ;;  %vm925_vm4 = vcmp.eq.f32.partialorder %v924_v55, 8.507059e+37  ;;  %v927_v62 = vor.u32 1.1754944e-38, %v926_v36  ;;  %v353_v31 = vadd.f32 %v352_v58, %v2098_v16 }
 0x1af   :  { %v1373_v53 = vadd.f32 %v1357_v45, %v1341_v24  ;;  %v923_v4 = vsel %vm922_vm3, %v2832_v3, %v919_v50  ;;  %v1239_v60 = vadd.f32 %v2768_v11, %v1238_v63  ;;  %v932_v8 = vsub.f32 1.0, %v931_v29  ;;  %v1674_v3 = vld [vmem:[#allocation6 + $0x68] sm:$0xff] }
 0x1b0   :  { %v928_v23 = vsel %vm925_vm4, %v927_v62, %v923_v4  ;;  %vm1241_vm5 = vweird.f32 %v2768_v11  ;;  %vm936_vm6 = vweird.f32 %v2865_v21  ;;  %v939_v9 = vand.u32 2147483647, %v2828_v40 }
 0x1b1   :  { %v1391_v41 = vmul.f32 %v2170_v2, %v1373_v53  ;;  %v1279_v43 = vmul.f32 %v928_v23, %v620_v20  ;;  %v933_v59 = vmul.f32 %v2865_v21, %v932_v8  ;;  %v941_v49 = vand.u32 2147483648, %v2828_v40  ;;  %vm2893_vm7 = vmor %vm1240_vm15, %vm1241_vm5 }
 0x1b2   :  { %v1660_v51 = vpop.eup %1659  ;;  %v1253_v56 = vmul.f32 %v2839_v15, %v1252_v13  ;;  %v1358_v42 = vmul.f32 %v1674_v3, %v1233_v34  ;;  %v1244_v33 = vand.u32 2147483647, %v2722_v1  ;;  %v623_v32 = vadd.f32 %v622_v25, %v2090_v12  ;;  %v1676_v34 = vld [vmem:[#allocation6 + $0x78] sm:$0xff] }
 0x1b3   :  { %1407 = vst [vmem:[#allocation11 + $0x60] sm:$0xff] %v1391_v41  ;;  %v1342_v14 = vmul.f32 %v1660_v51, %v1326_v47  ;;  %v1295_v0 = vadd.f32 %v1279_v43, %v353_v31  ;;  %v934_v57 = vadd.f32 %v2865_v21, %v933_v59  ;;  %vm935_vm8 = vweird.f32 %v2828_v40 }
 0x1b4   :  { %v1243_v12 = vsel %vm2893_vm7, %v2768_v11, %v1239_v60  ;;  %v1247_v6 = vor.u32 1.1754944e-38, %v1246_v19  ;;  %vm937_vm9 = vmor %vm935_vm8, %vm936_vm6  ;;  %vm940_vm10 = vcmp.eq.f32.partialorder %v939_v9, 8.507059e+37  ;;  %v942_v26 = vor.u32 1.1754944e-38, %v941_v49 }
 0x1b5   :  { %v1374_v1 = vadd.f32 %v1358_v42, %v1342_v14  ;;  %1661 = vtanh.f32 %v1295_v0  ;;  %v938_v35 = vsel %vm937_vm9, %v2865_v21, %v934_v57  ;;  %v356_v5 = vadd.f32 %v355_v27, %v2098_v16 }
 0x1b6   :  { %vm1245_vm11 = vcmp.eq.f32.partialorder %v1244_v33, 8.507059e+37  ;;  %v943_v37 = vsel %vm940_vm10, %v942_v26, %v938_v35  ;;  %v1254_v40 = vadd.f32 %v2839_v15, %v1253_v56  ;;  %vm1256_vm12 = vweird.f32 %v2839_v15 }
 0x1b7   :  { %v1261_v11 = vand.u32 2147483648, %v2792_v39  ;;  %v1392_v46 = vmul.f32 %v2170_v2, %v1374_v1  ;;  %v1248_v28 = vsel %vm1245_vm11, %v1247_v6, %v1243_v12  ;;  %v1280_v38 = vmul.f32 %v943_v37, %v623_v32 }
 0x1b8   :  { %vm1255_vm13 = vweird.f32 %v2792_v39  ;;  %v1259_v54 = vand.u32 2147483647, %v2792_v39  ;;  %v1327_v16 = vsub.f32 1.0, %v1248_v28  ;;  %v1359_v10 = vmul.f32 %v1675_v61, %v1248_v28 }
 0x1b9   :  { %1408 = vst [vmem:[#allocation11 + $0x68] sm:$0xff] %v1392_v46  ;;  %vm1257_vm14 = vmor %vm1255_vm13, %vm1256_vm12  ;;  %v1296_v17 = vadd.f32 %v1280_v38, %v356_v5  ;;  %v1262_v63 = vor.u32 1.1754944e-38, %v1261_v11 }
 0x1ba   :  { %v1258_v48 = vsel %vm1257_vm14, %v2839_v15, %v1254_v40  ;;  %vm1260_vm15 = vcmp.eq.f32.partialorder %v1259_v54, 8.507059e+37 }
 0x1bb   :  { %v1662_v58 = vpop.eup %1661  ;;  %1663 = vtanh.f32 %v1296_v17  ;;  %v1263_v21 = vsel %vm1260_vm15, %v1262_v63, %v1258_v48 }
 0x1bc   :  { %v1343_v19 = vmul.f32 %v1662_v58, %v1327_v16  ;;  %v1328_v36 = vsub.f32 1.0, %v1263_v21  ;;  %v1360_v52 = vmul.f32 %v1676_v34, %v1263_v21 }
 0x1be   :  { %v1375_v44 = vadd.f32 %v1359_v10, %v1343_v19 }
 0x1c0   :  { %v1393_v55 = vmul.f32 %v2170_v2, %v1375_v44 }
 0x1c1   :  { %v1664_v7 = vpop.eup %1663 }
 0x1c2   :  { %1409 = vst [vmem:[#allocation11 + $0x70] sm:$0xff] %v1393_v55  ;;  %v1344_v39 = vmul.f32 %v1664_v7, %v1328_v36 }
 0x1c4   :  { %v1376_v15 = vadd.f32 %v1360_v52, %v1344_v39 }
 0x1c6   :  { %v1394_v30 = vmul.f32 %v2170_v2, %v1376_v15 }
 0x1c8   :  { %1410 = vst [vmem:[#allocation11 + $0x78] sm:$0xff] %v1394_v30 }
 0x1c9   :  { %1423 = dma.vmem_to_hbm [thread:$0]  %s1416_s25, 2048, %s1418_s28, [#allocation5], %s1806_s9, %s1806_s9, %s1807_s10  }
 0x1ca   :  { %1803 = dma.done.wait [#allocation5], 2048  }
 0x1cb   :  { %1804 = vsyncadd [#allocation5], 4294965248 }
 0x1cc   :  { %1428 = vsyncpa [#allocation4], 1 }
 0x1cd   :  { %1429 = vsyncpa [#allocation7], 1 }
 0x1ce   :  { %1430 = vsyncpa [#allocation10], 1 }
 0x1cf   :  { %1431 = vsyncpa [#allocation5], 1 }

</bundles_post_ra>
